<compile_context>
chip_gen: v6e
topology: v6e:2x2x1
jax: 0.10.0
libtpu: 0.0.40
codegen_flags: <defaults>
</compile_context>

<pallas_src>
import functools

import jax
import jax.numpy as jnp
import numpy as np
from jax.experimental import pallas as pl
from jax.experimental.pallas import tpu as pltpu

_LANE = 128
_SQRT_HALF = 0.7071067811865476
_SQRT_2_OVER_PI = 0.7978845608028654


def _round_up(v, m):
    return -(-v // m) * m


def _gelu(x, approx=True):
    if approx:
        # tanh form -> EUP (own bundle slot); tiny deviation from exact erf.
        return 0.5 * x * (1.0 + jnp.tanh(
            jnp.float32(_SQRT_2_OVER_PI) * (x + 0.044715 * x * x * x)))
    # exact erf (nn.GELU default) -- long VALU polynomial, slower.
    return 0.5 * x * (1.0 + jax.lax.erf(x * jnp.float32(_SQRT_HALF)))


def _tpu_config():
    """Generation-aware scratch dtype / VMEM budget."""
    kind = ""
    try:
        kind = jax.devices()[0].device_kind.lower()
    except Exception:
        pass
    if any(t in kind for t in ("v2", "v3", "v4", "v5")):
        # v5e & older: no bf16 VPU, 128 MiB physical VMEM.
        return dict(hp_dtype=jnp.float32, vmem_limit=96 * 2**20, budget=20 * 2**20)
    if "v6" in kind:
        return dict(hp_dtype=jnp.bfloat16, vmem_limit=96 * 2**20, budget=24 * 2**20)
    if "v7" in kind or "7x" in kind:
        # 64 MiB physical VMEM per TensorCore.
        return dict(hp_dtype=jnp.bfloat16, vmem_limit=48 * 2**20, budget=20 * 2**20)
    # Unknown generation: conservative.
    return dict(hp_dtype=jnp.float32, vmem_limit=48 * 2**20, budget=16 * 2**20)


def _irffn_kernel(x_ref, xt_ref, xb_ref,
                  w1_ref, b1_ref, dw_ref, bdw_ref, w2_ref, b2_ref,
                  o_ref, hp_ref, *, approx_gelu):
    """One (batch, row-tile) grid step.

    x_ref  : (1, TH, W, Cin) f32      current row tile
    xt_ref : (1, 1,  W, Cin) f32      row above the tile (clamped at image top)
    xb_ref : (1, 1,  W, Cin) f32      row below the tile (clamped at image bottom)
    w1_ref : (Cin, Cp) bf16           conv1 weight, BN folded, Cp = lane-padded Cexp
    b1_ref : (1, Cp)   f32
    dw_ref : (3, 3, Cp) f32           depthwise weight, BN folded
    bdw_ref: (1, Cp)   f32
    w2_ref : (Cp, Cin) bf16           conv2 weight, BN folded
    b2_ref : (1, Cin)  f32
    o_ref  : (1, TH, W, Cin) f32
    hp_ref : ((TH+2)*Wp, Cp) f32|bf16 scratch: row-padded conv1 output,
                                      row pitch Wp = round_up(W, 8)
    """
    i = pl.program_id(1)
    last = pl.num_programs(1) - 1

    x = x_ref[0]                                    # (TH, W, Cin)
    TH, W, Cin = x.shape
    Cp = w1_ref.shape[1]
    n_rows = hp_ref.shape[0]
    Wp = n_rows // (TH + 2)

    # ---- conv1 (1x1, BN folded) + GELU: ONE matmul over tile + halo rows ----
    xt = xt_ref[0, 0]                               # (W, Cin)
    xb = xb_ref[0, 0]
    if Wp == W:
        rows = jnp.concatenate([xt, x.reshape(TH * W, Cin), xb], axis=0)
    else:
        # Pitch-pad every image row to Wp columns so the depthwise slices and
        # rolls below stay sublane-aligned (CMT widths 28 / 14 / 7).
        pad2, pad3 = ((0, Wp - W), (0, 0)), ((0, 0), (0, Wp - W), (0, 0))
        rows = jnp.concatenate(
            [jnp.pad(xt, pad2),
             jnp.pad(x, pad3).reshape(TH * Wp, Cin),
             jnp.pad(xb, pad2)], axis=0)

    h = jnp.dot(rows.astype(jnp.bfloat16), w1_ref[...],
                preferred_element_type=jnp.float32) + b1_ref[...]
    hp_ref[...] = _gelu(h, approx_gelu).astype(hp_ref.dtype)

    # Out-of-image halo rows are zero padding for the 3x3 conv.
    @pl.when(i == 0)
    def _():
        hp_ref[pl.ds(0, Wp)] = jnp.zeros((Wp, Cp), hp_ref.dtype)

    @pl.when(i == last)
    def _():
        hp_ref[pl.ds((TH + 1) * Wp, Wp)] = jnp.zeros((Wp, Cp), hp_ref.dtype)

    # ---- 3x3 depthwise conv (BN folded) + GELU ----
    # Flat row index r = (y + 1) * Wp + x.  dx = +-1 taps are static XLU rolls
    # of the whole slab; the row-crossing wrap is exactly what the iota edge
    # masks zero out.  dy taps are aligned static row slices.
    hp = hp_ref[...].astype(jnp.float32)            # (n_rows, Cp)
    col = jax.lax.broadcasted_iota(jnp.int32, (n_rows, Cp), 0) % Wp
    hl = jnp.where(col == 0, 0.0, pltpu.roll(hp, 1, axis=0))              # (y, x-1)
    hr = jnp.where(col == W - 1, 0.0, pltpu.roll(hp, n_rows - 1, axis=0)) # (y, x+1)

    dwk = dw_ref[...]                               # (3, 3, Cp)
    acc = jnp.zeros((TH * Wp, Cp), jnp.float32)
    for dy in range(3):
        lo, hi = dy * Wp, dy * Wp + TH * Wp
        acc = acc + hl[lo:hi] * dwk[dy, 0]
        acc = acc + hp[lo:hi] * dwk[dy, 1]
        acc = acc + hr[lo:hi] * dwk[dy, 2]
    h2 = _gelu(acc + bdw_ref[...], approx_gelu)     # (TH*Wp, Cp)

    # ---- conv2 (1x1, BN folded) + residual add ----
    y = jnp.dot(h2.astype(jnp.bfloat16), w2_ref[...],
                preferred_element_type=jnp.float32) + b2_ref[...]
    if Wp == W:
        y = y.reshape(TH, W, Cin)
    else:
        y = y.reshape(TH, Wp, Cin)[:, :W, :]
    o_ref[0] = (x + y).astype(o_ref.dtype)


def _pick_block_h(N, H, W, Cp, hp_bytes, budget_bytes):
    """Largest row tile whose live Cp-wide slabs fit the VMEM budget, keeping
    >= 2 grid programs when possible (both v7x TensorCores busy)."""
    wp = _round_up(W, 8)
    per_row = wp * Cp * (3 * hp_bytes + 14)   # hp/hl/hr + f32 acc/h2/h slabs
    th = int(max(1, min(H, budget_bytes // per_row - 2)))
    if N * (-(-H // th)) < 2 and H > 1:
        th = (H + 1) // 2
    while H % th:
        th -= 1
    return th


def irffn_forward_nhwc(x_nhwc, params, *, block_h=None, approx_gelu=True,
                       hp_dtype=None):
    """IRFFN forward on NHWC input (preferred entry: no layout transposes)."""
    w1, b1, dw, bdw, w2, b2 = params
    N, H, W, Cin = x_nhwc.shape
    Cp = w1.shape[1]

    cfg = _tpu_config()
    if hp_dtype is None:
        hp_dtype = cfg["hp_dtype"]
    hp_bytes = 2 if hp_dtype == jnp.bfloat16 else 4

    th = block_h if block_h is not None else _pick_block_h(
        N, H, W, Cp, hp_bytes, cfg["budget"])
    th = max(1, min(th, H))
    while H % th:                      # snap to a divisor of H
        th -= 1
    n_row_tiles = H // th
    wp = _round_up(W, 8)
    pad_rows = (th + 2) * wp

    tile_map = lambda n, i: (n, i, 0, 0)
    top_halo_map = lambda n, i: (n, jnp.maximum(i * th - 1, 0), 0, 0)
    bot_halo_map = lambda n, i: (n, jnp.minimum((i + 1) * th, H - 1), 0, 0)
    const2 = lambda n, i: (0, 0)
    const3 = lambda n, i: (0, 0, 0)

    grid_spec = pltpu.PrefetchScalarGridSpec(
        num_scalar_prefetch=0,
        grid=(N, n_row_tiles),
        in_specs=[
            pl.BlockSpec((1, th, W, Cin), tile_map),
            pl.BlockSpec((1, 1, W, Cin), top_halo_map),
            pl.BlockSpec((1, 1, W, Cin), bot_halo_map),
            pl.BlockSpec((Cin, Cp), const2),
            pl.BlockSpec((1, Cp), const2),
            pl.BlockSpec((3, 3, Cp), const3),
            pl.BlockSpec((1, Cp), const2),
            pl.BlockSpec((Cp, Cin), const2),
            pl.BlockSpec((1, Cin), const2),
        ],
        out_specs=pl.BlockSpec((1, th, W, Cin), tile_map),
        scratch_shapes=[pltpu.VMEM((pad_rows, Cp), hp_dtype)],
    )
    kernel = functools.partial(_irffn_kernel, approx_gelu=approx_gelu)
    return pl.pallas_call(
        kernel,
        out_shape=jax.ShapeDtypeStruct((N, H, W, Cin), jnp.float32),
        grid_spec=grid_spec,
        compiler_params=pltpu.CompilerParams(
            dimension_semantics=("parallel", "parallel"),
            vmem_limit_bytes=cfg["vmem_limit"],
        ),
    )(x_nhwc, x_nhwc, x_nhwc, w1, b1, dw, bdw, w2, b2)


def irffn_forward_nchw(x_nchw, params, *, block_h=None, approx_gelu=True,
                       hp_dtype=None):
    """PyTorch-compatible entry (NCHW).  Each transpose is a full HBM round
    trip; prefer irffn_forward_nhwc when the surrounding model can stay NHWC."""
    x = jnp.transpose(x_nchw, (0, 2, 3, 1))
    y = irffn_forward_nhwc(x, params, block_h=block_h, approx_gelu=approx_gelu,
                           hp_dtype=hp_dtype)
    return jnp.transpose(y, (0, 3, 1, 2))


def _fold_bn(scale_shape, w, b, gamma, beta, mean, var, eps=1e-5):
    """Fold an eval-mode BatchNorm into the preceding conv (per output channel)."""
    s = gamma / jnp.sqrt(var + eps)
    return w * s.reshape(scale_shape), (b - mean) * s + beta


def make_params(key, in_channels, R):
    """Random IRFFN parameters, BN-folded, lane-padded and cast for the kernel."""
    exp_channels = int(in_channels * R)
    Cp = ((exp_channels + _LANE - 1) // _LANE) * _LANE
    pad = Cp - exp_channels
    ks = jax.random.split(key, 16)
    n = lambda k, shape, sc=0.1: sc * jax.random.normal(k, shape, jnp.float32)

    # conv1: 1x1 in->exp (stored (Cin, Cexp)); dwconv: 3x3 depthwise (3,3,Cexp);
    # conv2: 1x1 exp->in (stored (Cexp, Cin)).  Each followed by a BatchNorm.
    w1 = n(ks[0], (in_channels, exp_channels)); b1 = n(ks[1], (exp_channels,))
    g1, be1 = 1.0 + n(ks[2], (exp_channels,)), n(ks[3], (exp_channels,))
    m1, v1 = n(ks[4], (exp_channels,)), 0.5 + jnp.abs(n(ks[5], (exp_channels,)))

    dw = n(ks[6], (3, 3, exp_channels)); bdw = n(ks[7], (exp_channels,))
    g2, be2 = 1.0 + n(ks[8], (exp_channels,)), n(ks[9], (exp_channels,))
    m2, v2 = n(ks[10], (exp_channels,)), 0.5 + jnp.abs(n(ks[11], (exp_channels,)))

    w2 = n(ks[12], (exp_channels, in_channels)); b2 = n(ks[13], (in_channels,))
    g3, be3 = 1.0 + n(ks[14], (in_channels,)), n(ks[15], (in_channels,))
    m3, v3 = jnp.zeros((in_channels,)), jnp.ones((in_channels,))

    w1f, b1f = _fold_bn((1, -1), w1, b1, g1, be1, m1, v1)
    dwf, bdwf = _fold_bn((1, 1, -1), dw, bdw, g2, be2, m2, v2)
    w2f, b2f = _fold_bn((1, -1), w2, b2, g3, be3, m3, v3)

    # Zero-pad the expanded channel dim to a lane multiple (zero bias => padded
    # channels stay exactly zero through GELU/dwconv and contribute nothing to
    # conv2).  MXU operands are stored in bf16; biases / dw stay f32.
    w1p = jnp.pad(w1f, ((0, 0), (0, pad))).astype(jnp.bfloat16)
    b1p = jnp.pad(b1f, ((0, pad),)).reshape(1, Cp)
    dwp = jnp.pad(dwf, ((0, 0), (0, 0), (0, pad)))
    bdwp = jnp.pad(bdwf, ((0, pad),)).reshape(1, Cp)
    w2p = jnp.pad(w2f, ((0, pad), (0, 0))).astype(jnp.bfloat16)
    b2p = b2f.reshape(1, in_channels)
    return (w1p, b1p, dwp, bdwp, w2p, b2p)


def irffn_reference_nhwc(x, params, *, approx_gelu=True, store_dtype=jnp.float32):
    """Plain-JAX reference with the same quantization points as the kernel."""
    w1, b1, dw, bdw, w2, b2 = params
    q = lambda a: a.astype(jnp.bfloat16).astype(jnp.float32)
    w1f, w2f = w1.astype(jnp.float32), w2.astype(jnp.float32)
    _, H, W, _ = x.shape

    h = _gelu(jnp.einsum("nhwc,ce->nhwe", q(x), w1f) + b1[0], approx_gelu)
    h = h.astype(store_dtype).astype(jnp.float32)   # kernel's hp scratch dtype
    hp = jnp.pad(h, ((0, 0), (1, 1), (1, 1), (0, 0)))
    acc = jnp.zeros_like(h)
    for dy in range(3):
        for dx in range(3):
            acc = acc + hp[:, dy:dy + H, dx:dx + W, :] * dw[dy, dx]
    h2 = _gelu(acc + bdw[0], approx_gelu)
    y = jnp.einsum("nhwe,ec->nhwc", q(h2), w2f) + b2[0]
    return x + y


if __name__ == "__main__":
    in_channels, R = 4, 4              # exp_channels = 16 (lane-padded to 128)
    N, H, W = 2, 16, 16

    key = jax.random.PRNGKey(0)
    kx, kp = jax.random.split(key)
    x_nchw = jax.random.normal(kx, (N, in_channels, H, W), jnp.float32)
    params = make_params(kp, in_channels, R)

    # block_h=8 -> grid (2 batch x 2 row tiles), exercising the halo path.
    out = jax.block_until_ready(irffn_forward_nchw(x_nchw, params, block_h=8))
    assert out.shape == x_nchw.shape and out.dtype == jnp.float32

    # Correctness check against a plain-JAX reference with matching numerics
    # (same tanh-GELU and same scratch storage dtype as the kernel).
    cfg = _tpu_config()
    ref = jnp.transpose(
        irffn_reference_nhwc(jnp.transpose(x_nchw, (0, 2, 3, 1)), params,
                             approx_gelu=True, store_dtype=cfg["hp_dtype"]),
        (0, 3, 1, 2))
    np.testing.assert_allclose(np.asarray(out), np.asarray(ref),
                               rtol=1e-2, atol=1e-2)
    print("KERNEL_OK")
</pallas_src>

<mosaic_0001>
module attributes {stable_mosaic.version = 11 : i64} {
  func.func @_irffn_kernel(%arg0: i32, %arg1: i32, %arg2: memref<1x8x16x4xf32, #tpu.memory_space<vmem>>, %arg3: memref<1x1x16x4xf32, #tpu.memory_space<vmem>>, %arg4: memref<1x1x16x4xf32, #tpu.memory_space<vmem>>, %arg5: memref<4x128xbf16, #tpu.memory_space<vmem>>, %arg6: memref<1x128xf32, #tpu.memory_space<vmem>>, %arg7: memref<3x3x128xf32, #tpu.memory_space<vmem>>, %arg8: memref<1x128xf32, #tpu.memory_space<vmem>>, %arg9: memref<128x4xbf16, #tpu.memory_space<vmem>>, %arg10: memref<1x4xf32, #tpu.memory_space<vmem>>, %arg11: memref<1x8x16x4xf32, #tpu.memory_space<vmem>>, %arg12: memref<160x128xf32, #tpu.memory_space<vmem>>) attributes {dimension_semantics = [#tpu.dimension_semantics<parallel>, #tpu.dimension_semantics<parallel>], iteration_bounds = array<i64: 2, 2>, scalar_prefetch = 0 : i64, scratch_operands = 1 : i64, tpu.core_type = #tpu.core_type<tc>, window_params = [{transform_indices = @transform_0, window_bounds = array<i64: 1, 8, 16, 4>}, {transform_indices = @transform_1, window_bounds = array<i64: 1, 1, 16, 4>}, {transform_indices = @transform_2, window_bounds = array<i64: 1, 1, 16, 4>}, {pipeline_mode = #tpu.pipeline_mode<synchronous>, transform_indices = @transform_3, window_bounds = array<i64: 4, 128>}, {pipeline_mode = #tpu.pipeline_mode<synchronous>, transform_indices = @transform_4, window_bounds = array<i64: 1, 128>}, {pipeline_mode = #tpu.pipeline_mode<synchronous>, transform_indices = @transform_5, window_bounds = array<i64: 3, 3, 128>}, {pipeline_mode = #tpu.pipeline_mode<synchronous>, transform_indices = @transform_6, window_bounds = array<i64: 1, 128>}, {pipeline_mode = #tpu.pipeline_mode<synchronous>, transform_indices = @transform_7, window_bounds = array<i64: 128, 4>}, {pipeline_mode = #tpu.pipeline_mode<synchronous>, transform_indices = @transform_8, window_bounds = array<i64: 1, 4>}, {transform_indices = @transform_9, window_bounds = array<i64: 1, 8, 16, 4>}]} {
    %c0 = arith.constant 0 : index
    %c0_0 = arith.constant 0 : index
    %c0_1 = arith.constant 0 : index
    %c0_2 = arith.constant 0 : index
    %0 = vector.load %arg2[%c0, %c0_0, %c0_1, %c0_2] : memref<1x8x16x4xf32, #tpu.memory_space<vmem>>, vector<1x8x16x4xf32>
    %1 = vector.shape_cast %0 : vector<1x8x16x4xf32> to vector<8x16x4xf32>
    %c0_3 = arith.constant 0 : index
    %c0_4 = arith.constant 0 : index
    %c0_5 = arith.constant 0 : index
    %c0_6 = arith.constant 0 : index
    %2 = vector.load %arg3[%c0_3, %c0_4, %c0_5, %c0_6] : memref<1x1x16x4xf32, #tpu.memory_space<vmem>>, vector<1x1x16x4xf32>
    %3 = vector.shape_cast %2 : vector<1x1x16x4xf32> to vector<16x4xf32>
    %c0_7 = arith.constant 0 : index
    %c0_8 = arith.constant 0 : index
    %c0_9 = arith.constant 0 : index
    %c0_10 = arith.constant 0 : index
    %4 = vector.load %arg4[%c0_7, %c0_8, %c0_9, %c0_10] : memref<1x1x16x4xf32, #tpu.memory_space<vmem>>, vector<1x1x16x4xf32>
    %5 = vector.shape_cast %4 : vector<1x1x16x4xf32> to vector<16x4xf32>
    %6 = vector.shape_cast %1 : vector<8x16x4xf32> to vector<128x4xf32>
    %7 = tpu.concatenate %3, %6, %5 in 0 : vector<16x4xf32>, vector<128x4xf32>, vector<16x4xf32> -> vector<160x4xf32>
    %8 = arith.truncf %7 : vector<160x4xf32> to vector<160x4xbf16>
    %c0_11 = arith.constant 0 : index
    %c0_12 = arith.constant 0 : index
    %9 = vector.load %arg5[%c0_11, %c0_12] : memref<4x128xbf16, #tpu.memory_space<vmem>>, vector<4x128xbf16>
    %cst = arith.constant dense<0.000000e+00> : vector<160x128xf32>
    %10 = tpu.matmul %8, %9, %cst {dimension_numbers = #tpu.dot_dimension_numbers<[1], [0], [0], [1], [0, 0, 1, 1], [], []>} : vector<160x4xbf16>, vector<4x128xbf16>, vector<160x128xf32> -> vector<160x128xf32>
    %c0_13 = arith.constant 0 : index
    %c0_14 = arith.constant 0 : index
    %11 = vector.load %arg6[%c0_13, %c0_14] : memref<1x128xf32, #tpu.memory_space<vmem>>, vector<1x128xf32>
    %12 = vector.broadcast %11 : vector<1x128xf32> to vector<160x128xf32>
    %13 = arith.addf %10, %12 : vector<160x128xf32>
    %cst_15 = arith.constant 5.000000e-01 : f32
    %14 = vector.broadcast %cst_15 : f32 to vector<160x128xf32>
    %15 = arith.mulf %14, %13 : vector<160x128xf32>
    %cst_16 = arith.constant 4.471500e-02 : f32
    %16 = vector.broadcast %cst_16 : f32 to vector<160x128xf32>
    %17 = arith.mulf %16, %13 : vector<160x128xf32>
    %18 = arith.mulf %17, %13 : vector<160x128xf32>
    %19 = arith.mulf %18, %13 : vector<160x128xf32>
    %20 = arith.addf %13, %19 : vector<160x128xf32>
    %cst_17 = arith.constant 0.797884583 : f32
    %21 = vector.broadcast %cst_17 : f32 to vector<160x128xf32>
    %22 = arith.mulf %21, %20 : vector<160x128xf32>
    %23 = math.tanh %22 : vector<160x128xf32>
    %cst_18 = arith.constant 1.000000e+00 : f32
    %24 = vector.broadcast %cst_18 : f32 to vector<160x128xf32>
    %25 = arith.addf %24, %23 : vector<160x128xf32>
    %26 = arith.mulf %15, %25 : vector<160x128xf32>
    %c0_19 = arith.constant 0 : index
    %c0_20 = arith.constant 0 : index
    %27 = vector.load %arg12[%c0_19, %c0_20] : memref<160x128xf32, #tpu.memory_space<vmem>>, vector<160x128xf32>
    tpu.vector_store %arg12[%c0_19, %c0_20], %26 {strides = array<i32>} : memref<160x128xf32, #tpu.memory_space<vmem>>, vector<160x128xf32>,
    %c0_i32 = arith.constant 0 : i32
    %28 = arith.cmpi eq, %arg1, %c0_i32 : i32
    %29 = arith.extui %28 : i1 to i32
    %c0_i32_21 = arith.constant 0 : i32
    %30 = arith.cmpi ne, %29, %c0_i32_21 : i32
    scf.if %30 {
      %cst_53 = arith.constant 0.000000e+00 : f32
      %154 = vector.broadcast %cst_53 : f32 to vector<16x128xf32>
      %c0_54 = arith.constant 0 : index
      %c0_55 = arith.constant 0 : index
      %155 = vector.load %arg12[%c0_54, %c0_55] : memref<160x128xf32, #tpu.memory_space<vmem>>, vector<16x128xf32>
      tpu.vector_store %arg12[%c0_54, %c0_55], %154 {strides = array<i32>} : memref<160x128xf32, #tpu.memory_space<vmem>>, vector<16x128xf32>,
    } else {
    }
    %c1_i32 = arith.constant 1 : i32
    %31 = arith.cmpi eq, %arg1, %c1_i32 : i32
    %32 = arith.extui %31 : i1 to i32
    %c0_i32_22 = arith.constant 0 : i32
    %33 = arith.cmpi ne, %32, %c0_i32_22 : i32
    scf.if %33 {
      %cst_53 = arith.constant 0.000000e+00 : f32
      %154 = vector.broadcast %cst_53 : f32 to vector<16x128xf32>
      %c144 = arith.constant 144 : index
      %c0_54 = arith.constant 0 : index
      %155 = vector.load %arg12[%c144, %c0_54] : memref<160x128xf32, #tpu.memory_space<vmem>>, vector<16x128xf32>
      tpu.vector_store %arg12[%c144, %c0_54], %154 {strides = array<i32>} : memref<160x128xf32, #tpu.memory_space<vmem>>, vector<16x128xf32>,
    } else {
    }
    %c0_23 = arith.constant 0 : index
    %c0_24 = arith.constant 0 : index
    %34 = vector.load %arg12[%c0_23, %c0_24] : memref<160x128xf32, #tpu.memory_space<vmem>>, vector<160x128xf32>
    %35 = tpu.iota {dimensions = array<i32: 0>} : vector<160x128xi32>
    %c16_i32 = arith.constant 16 : i32
    %c0_i32_25 = arith.constant 0 : i32
    %36 = arith.cmpi eq, %c16_i32, %c0_i32_25 : i32
    %c1_i32_26 = arith.constant 1 : i32
    %37 = arith.select %36, %c1_i32_26, %c16_i32 : i32
    %38 = vector.broadcast %37 : i32 to vector<160x128xi32>
    %39 = arith.remsi %35, %38 : vector<160x128xi32>
    %c0_i32_27 = arith.constant 0 : i32
    %40 = vector.broadcast %c0_i32_27 : i32 to vector<160x128xi32>
    %41 = arith.cmpi ne, %39, %40 : vector<160x128xi32>
    %c0_i32_28 = arith.constant 0 : i32
    %42 = vector.broadcast %c0_i32_28 : i32 to vector<160x128xi32>
    %43 = arith.cmpi slt, %39, %42 : vector<160x128xi32>
    %c0_i32_29 = arith.constant 0 : i32
    %44 = arith.cmpi slt, %37, %c0_i32_29 : i32
    %45 = vector.broadcast %44 : i1 to vector<160x128xi1>
    %46 = vector.broadcast %45 : vector<160x128xi1> to vector<160x128xi1>
    %47 = arith.xori %43, %46 : vector<160x128xi1>
    %48 = arith.andi %47, %41 : vector<160x128xi1>
    %49 = vector.broadcast %37 : i32 to vector<160x128xi32>
    %50 = arith.addi %39, %49 : vector<160x128xi32>
    %51 = arith.select %48, %50, %39 : vector<160x128xi1>, vector<160x128xi32>
    %c0_i32_30 = arith.constant 0 : i32
    %52 = vector.broadcast %c0_i32_30 : i32 to vector<160x128xi32>
    %53 = arith.cmpi eq, %51, %52 : vector<160x128xi32>
    %c1_i32_31 = arith.constant 1 : i32
    %54 = tpu.dynamic_rotate %34 by %c1_i32_31 dim 0 : vector<160x128xf32>, i32 -> vector<160x128xf32>
    %cst_32 = arith.constant 0.000000e+00 : f32
    %55 = vector.broadcast %cst_32 : f32 to vector<160x128xf32>
    %56 = arith.select %53, %55, %54 : vector<160x128xi1>, vector<160x128xf32>
    %c15_i32 = arith.constant 15 : i32
    %57 = vector.broadcast %c15_i32 : i32 to vector<160x128xi32>
    %58 = arith.cmpi eq, %51, %57 : vector<160x128xi32>
    %c159_i32 = arith.constant 159 : i32
    %59 = tpu.dynamic_rotate %34 by %c159_i32 dim 0 : vector<160x128xf32>, i32 -> vector<160x128xf32>
    %cst_33 = arith.constant 0.000000e+00 : f32
    %60 = vector.broadcast %cst_33 : f32 to vector<160x128xf32>
    %61 = arith.select %58, %60, %59 : vector<160x128xi1>, vector<160x128xf32>
    %c0_34 = arith.constant 0 : index
    %c0_35 = arith.constant 0 : index
    %c0_36 = arith.constant 0 : index
    %62 = vector.load %arg7[%c0_34, %c0_35, %c0_36] : memref<3x3x128xf32, #tpu.memory_space<vmem>>, vector<3x3x128xf32>
    %cst_37 = arith.constant 0.000000e+00 : f32
    %63 = vector.broadcast %cst_37 : f32 to vector<128x128xf32>
    %64 = vector.extract_strided_slice %56 {offsets = [0, 0], sizes = [128, 128], strides = [1, 1]} : vector<160x128xf32> to vector<128x128xf32>
    %65 = vector.extract_strided_slice %62 {offsets = [0, 0, 0], sizes = [1, 1, 128], strides = [1, 1, 1]} : vector<3x3x128xf32> to vector<1x1x128xf32>
    %66 = vector.shape_cast %65 : vector<1x1x128xf32> to vector<128xf32>
    %67 = vector.shape_cast %66 : vector<128xf32> to vector<1x128xf32>
    %68 = vector.broadcast %67 : vector<1x128xf32> to vector<128x128xf32>
    %69 = arith.mulf %64, %68 : vector<128x128xf32>
    %70 = arith.addf %63, %69 : vector<128x128xf32>
    %71 = vector.extract_strided_slice %34 {offsets = [0, 0], sizes = [128, 128], strides = [1, 1]} : vector<160x128xf32> to vector<128x128xf32>
    %72 = vector.extract_strided_slice %62 {offsets = [0, 1, 0], sizes = [1, 1, 128], strides = [1, 1, 1]} : vector<3x3x128xf32> to vector<1x1x128xf32>
    %73 = vector.shape_cast %72 : vector<1x1x128xf32> to vector<128xf32>
    %74 = vector.shape_cast %73 : vector<128xf32> to vector<1x128xf32>
    %75 = vector.broadcast %74 : vector<1x128xf32> to vector<128x128xf32>
    %76 = arith.mulf %71, %75 : vector<128x128xf32>
    %77 = arith.addf %70, %76 : vector<128x128xf32>
    %78 = vector.extract_strided_slice %61 {offsets = [0, 0], sizes = [128, 128], strides = [1, 1]} : vector<160x128xf32> to vector<128x128xf32>
    %79 = vector.extract_strided_slice %62 {offsets = [0, 2, 0], sizes = [1, 1, 128], strides = [1, 1, 1]} : vector<3x3x128xf32> to vector<1x1x128xf32>
    %80 = vector.shape_cast %79 : vector<1x1x128xf32> to vector<128xf32>
    %81 = vector.shape_cast %80 : vector<128xf32> to vector<1x128xf32>
    %82 = vector.broadcast %81 : vector<1x128xf32> to vector<128x128xf32>
    %83 = arith.mulf %78, %82 : vector<128x128xf32>
    %84 = arith.addf %77, %83 : vector<128x128xf32>
    %85 = vector.extract_strided_slice %56 {offsets = [16, 0], sizes = [128, 128], strides = [1, 1]} : vector<160x128xf32> to vector<128x128xf32>
    %86 = vector.extract_strided_slice %62 {offsets = [1, 0, 0], sizes = [1, 1, 128], strides = [1, 1, 1]} : vector<3x3x128xf32> to vector<1x1x128xf32>
    %87 = vector.shape_cast %86 : vector<1x1x128xf32> to vector<128xf32>
    %88 = vector.shape_cast %87 : vector<128xf32> to vector<1x128xf32>
    %89 = vector.broadcast %88 : vector<1x128xf32> to vector<128x128xf32>
    %90 = arith.mulf %85, %89 : vector<128x128xf32>
    %91 = arith.addf %84, %90 : vector<128x128xf32>
    %92 = vector.extract_strided_slice %34 {offsets = [16, 0], sizes = [128, 128], strides = [1, 1]} : vector<160x128xf32> to vector<128x128xf32>
    %93 = vector.extract_strided_slice %62 {offsets = [1, 1, 0], sizes = [1, 1, 128], strides = [1, 1, 1]} : vector<3x3x128xf32> to vector<1x1x128xf32>
    %94 = vector.shape_cast %93 : vector<1x1x128xf32> to vector<128xf32>
    %95 = vector.shape_cast %94 : vector<128xf32> to vector<1x128xf32>
    %96 = vector.broadcast %95 : vector<1x128xf32> to vector<128x128xf32>
    %97 = arith.mulf %92, %96 : vector<128x128xf32>
    %98 = arith.addf %91, %97 : vector<128x128xf32>
    %99 = vector.extract_strided_slice %61 {offsets = [16, 0], sizes = [128, 128], strides = [1, 1]} : vector<160x128xf32> to vector<128x128xf32>
    %100 = vector.extract_strided_slice %62 {offsets = [1, 2, 0], sizes = [1, 1, 128], strides = [1, 1, 1]} : vector<3x3x128xf32> to vector<1x1x128xf32>
    %101 = vector.shape_cast %100 : vector<1x1x128xf32> to vector<128xf32>
    %102 = vector.shape_cast %101 : vector<128xf32> to vector<1x128xf32>
    %103 = vector.broadcast %102 : vector<1x128xf32> to vector<128x128xf32>
    %104 = arith.mulf %99, %103 : vector<128x128xf32>
    %105 = arith.addf %98, %104 : vector<128x128xf32>
    %106 = vector.extract_strided_slice %56 {offsets = [32, 0], sizes = [128, 128], strides = [1, 1]} : vector<160x128xf32> to vector<128x128xf32>
    %107 = vector.extract_strided_slice %62 {offsets = [2, 0, 0], sizes = [1, 1, 128], strides = [1, 1, 1]} : vector<3x3x128xf32> to vector<1x1x128xf32>
    %108 = vector.shape_cast %107 : vector<1x1x128xf32> to vector<128xf32>
    %109 = vector.shape_cast %108 : vector<128xf32> to vector<1x128xf32>
    %110 = vector.broadcast %109 : vector<1x128xf32> to vector<128x128xf32>
    %111 = arith.mulf %106, %110 : vector<128x128xf32>
    %112 = arith.addf %105, %111 : vector<128x128xf32>
    %113 = vector.extract_strided_slice %34 {offsets = [32, 0], sizes = [128, 128], strides = [1, 1]} : vector<160x128xf32> to vector<128x128xf32>
    %114 = vector.extract_strided_slice %62 {offsets = [2, 1, 0], sizes = [1, 1, 128], strides = [1, 1, 1]} : vector<3x3x128xf32> to vector<1x1x128xf32>
    %115 = vector.shape_cast %114 : vector<1x1x128xf32> to vector<128xf32>
    %116 = vector.shape_cast %115 : vector<128xf32> to vector<1x128xf32>
    %117 = vector.broadcast %116 : vector<1x128xf32> to vector<128x128xf32>
    %118 = arith.mulf %113, %117 : vector<128x128xf32>
    %119 = arith.addf %112, %118 : vector<128x128xf32>
    %120 = vector.extract_strided_slice %61 {offsets = [32, 0], sizes = [128, 128], strides = [1, 1]} : vector<160x128xf32> to vector<128x128xf32>
    %121 = vector.extract_strided_slice %62 {offsets = [2, 2, 0], sizes = [1, 1, 128], strides = [1, 1, 1]} : vector<3x3x128xf32> to vector<1x1x128xf32>
    %122 = vector.shape_cast %121 : vector<1x1x128xf32> to vector<128xf32>
    %123 = vector.shape_cast %122 : vector<128xf32> to vector<1x128xf32>
    %124 = vector.broadcast %123 : vector<1x128xf32> to vector<128x128xf32>
    %125 = arith.mulf %120, %124 : vector<128x128xf32>
    %126 = arith.addf %119, %125 : vector<128x128xf32>
    %c0_38 = arith.constant 0 : index
    %c0_39 = arith.constant 0 : index
    %127 = vector.load %arg8[%c0_38, %c0_39] : memref<1x128xf32, #tpu.memory_space<vmem>>, vector<1x128xf32>
    %128 = vector.broadcast %127 : vector<1x128xf32> to vector<128x128xf32>
    %129 = arith.addf %126, %128 : vector<128x128xf32>
    %cst_40 = arith.constant 5.000000e-01 : f32
    %130 = vector.broadcast %cst_40 : f32 to vector<128x128xf32>
    %131 = arith.mulf %130, %129 : vector<128x128xf32>
    %cst_41 = arith.constant 4.471500e-02 : f32
    %132 = vector.broadcast %cst_41 : f32 to vector<128x128xf32>
    %133 = arith.mulf %132, %129 : vector<128x128xf32>
    %134 = arith.mulf %133, %129 : vector<128x128xf32>
    %135 = arith.mulf %134, %129 : vector<128x128xf32>
    %136 = arith.addf %129, %135 : vector<128x128xf32>
    %cst_42 = arith.constant 0.797884583 : f32
    %137 = vector.broadcast %cst_42 : f32 to vector<128x128xf32>
    %138 = arith.mulf %137, %136 : vector<128x128xf32>
    %139 = math.tanh %138 : vector<128x128xf32>
    %cst_43 = arith.constant 1.000000e+00 : f32
    %140 = vector.broadcast %cst_43 : f32 to vector<128x128xf32>
    %141 = arith.addf %140, %139 : vector<128x128xf32>
    %142 = arith.mulf %131, %141 : vector<128x128xf32>
    %143 = arith.truncf %142 : vector<128x128xf32> to vector<128x128xbf16>
    %c0_44 = arith.constant 0 : index
    %c0_45 = arith.constant 0 : index
    %144 = vector.load %arg9[%c0_44, %c0_45] : memref<128x4xbf16, #tpu.memory_space<vmem>>, vector<128x4xbf16>
    %cst_46 = arith.constant dense<0.000000e+00> : vector<128x4xf32>
    %145 = tpu.matmul %143, %144, %cst_46 {dimension_numbers = #tpu.dot_dimension_numbers<[1], [0], [0], [1], [0, 0, 1, 1], [], []>} : vector<128x128xbf16>, vector<128x4xbf16>, vector<128x4xf32> -> vector<128x4xf32>
    %c0_47 = arith.constant 0 : index
    %c0_48 = arith.constant 0 : index
    %146 = vector.load %arg10[%c0_47, %c0_48] : memref<1x4xf32, #tpu.memory_space<vmem>>, vector<1x4xf32>
    %147 = vector.broadcast %146 : vector<1x4xf32> to vector<128x4xf32>
    %148 = arith.addf %145, %147 : vector<128x4xf32>
    %149 = vector.shape_cast %148 : vector<128x4xf32> to vector<8x16x4xf32>
    %150 = arith.addf %1, %149 : vector<8x16x4xf32>
    %c0_49 = arith.constant 0 : index
    %c0_50 = arith.constant 0 : index
    %c0_51 = arith.constant 0 : index
    %c0_52 = arith.constant 0 : index
    %151 = vector.load %arg11[%c0_49, %c0_50, %c0_51, %c0_52] : memref<1x8x16x4xf32, #tpu.memory_space<vmem>>, vector<1x8x16x4xf32>
    %152 = vector.shape_cast %151 : vector<1x8x16x4xf32> to vector<8x16x4xf32>
    %153 = vector.shape_cast %150 : vector<8x16x4xf32> to vector<1x8x16x4xf32>
    tpu.vector_store %arg11[%c0_49, %c0_50, %c0_51, %c0_52], %153 {strides = array<i32>} : memref<1x8x16x4xf32, #tpu.memory_space<vmem>>, vector<1x8x16x4xf32>,
    return
  }
  func.func @transform_0(%arg0: i32, %arg1: i32) -> (i32, i32, i32, i32) {
    %c0_i32 = arith.constant 0 : i32
    %c0_i32_0 = arith.constant 0 : i32
    %c0_i32_1 = arith.constant 0 : i32
    return %arg0, %arg1, %c0_i32, %c0_i32_0 : i32, i32, i32, i32
  }
  func.func @transform_1(%arg0: i32, %arg1: i32) -> (i32, i32, i32, i32) {
    %c8_i32 = arith.constant 8 : i32
    %0 = arith.muli %arg1, %c8_i32 : i32
    %c1_i32 = arith.constant 1 : i32
    %1 = arith.subi %0, %c1_i32 : i32
    %c0_i32 = arith.constant 0 : i32
    %2 = arith.maxsi %1, %c0_i32 : i32
    %c0_i32_0 = arith.constant 0 : i32
    %c0_i32_1 = arith.constant 0 : i32
    %c0_i32_2 = arith.constant 0 : i32
    return %arg0, %2, %c0_i32_0, %c0_i32_1 : i32, i32, i32, i32
  }
  func.func @transform_2(%arg0: i32, %arg1: i32) -> (i32, i32, i32, i32) {
    %c1_i32 = arith.constant 1 : i32
    %0 = arith.addi %arg1, %c1_i32 : i32
    %c8_i32 = arith.constant 8 : i32
    %1 = arith.muli %0, %c8_i32 : i32
    %c15_i32 = arith.constant 15 : i32
    %2 = arith.minsi %1, %c15_i32 : i32
    %c0_i32 = arith.constant 0 : i32
    %c0_i32_0 = arith.constant 0 : i32
    %c0_i32_1 = arith.constant 0 : i32
    return %arg0, %2, %c0_i32, %c0_i32_0 : i32, i32, i32, i32
  }
  func.func @transform_3(%arg0: i32, %arg1: i32) -> (i32, i32) {
    %c0_i32 = arith.constant 0 : i32
    %c0_i32_0 = arith.constant 0 : i32
    %c0_i32_1 = arith.constant 0 : i32
    return %c0_i32, %c0_i32_0 : i32, i32
  }
  func.func @transform_4(%arg0: i32, %arg1: i32) -> (i32, i32) {
    %c0_i32 = arith.constant 0 : i32
    %c0_i32_0 = arith.constant 0 : i32
    %c0_i32_1 = arith.constant 0 : i32
    return %c0_i32, %c0_i32_0 : i32, i32
  }
  func.func @transform_5(%arg0: i32, %arg1: i32) -> (i32, i32, i32) {
    %c0_i32 = arith.constant 0 : i32
    %c0_i32_0 = arith.constant 0 : i32
    %c0_i32_1 = arith.constant 0 : i32
    %c0_i32_2 = arith.constant 0 : i32
    return %c0_i32, %c0_i32_0, %c0_i32_1 : i32, i32, i32
  }
  func.func @transform_6(%arg0: i32, %arg1: i32) -> (i32, i32) {
    %c0_i32 = arith.constant 0 : i32
    %c0_i32_0 = arith.constant 0 : i32
    %c0_i32_1 = arith.constant 0 : i32
    return %c0_i32, %c0_i32_0 : i32, i32
  }
  func.func @transform_7(%arg0: i32, %arg1: i32) -> (i32, i32) {
    %c0_i32 = arith.constant 0 : i32
    %c0_i32_0 = arith.constant 0 : i32
    %c0_i32_1 = arith.constant 0 : i32
    return %c0_i32, %c0_i32_0 : i32, i32
  }
  func.func @transform_8(%arg0: i32, %arg1: i32) -> (i32, i32) {
    %c0_i32 = arith.constant 0 : i32
    %c0_i32_0 = arith.constant 0 : i32
    %c0_i32_1 = arith.constant 0 : i32
    return %c0_i32, %c0_i32_0 : i32, i32
  }
  func.func @transform_9(%arg0: i32, %arg1: i32) -> (i32, i32, i32, i32) {
    %c0_i32 = arith.constant 0 : i32
    %c0_i32_0 = arith.constant 0 : i32
    %c0_i32_1 = arith.constant 0 : i32
    return %arg0, %arg1, %c0_i32, %c0_i32_0 : i32, i32, i32, i32
  }
}

</mosaic_0001>

<bundles_post_ra>
// kernel: tpu_custom_call.1
= control target key start
LH: loop header
LB: loop body
LE: loop exit
PB: predicated region body
PF: predicated region fallthrough
CT: control target
= control target key end

     0   :  { %s2567_s30 = smov 0   ;;  %s2569_s10 = smov 0   ;;  %s3742_s0 = inlined_call_operand.vmem [shape: f32[2,16,16,4], index: 0, kind: input, shape index: {}]   ;;  %s3743_s1 = inlined_call_operand.vmem [shape: f32[2,16,16,4], index: 1, kind: input, shape index: {}]   ;;  %s3744_s2 = inlined_call_operand.vmem [shape: f32[2,16,16,4], index: 2, kind: input, shape index: {}]   ;;  %s3745_s3 = inlined_call_operand.vmem [shape: bf16[4,128], index: 3, kind: input, shape index: {}]   ;;  %s3746_s4 = inlined_call_operand.vmem [shape: f32[1,128], index: 4, kind: input, shape index: {}]   ;;  %s3747_s5 = inlined_call_operand.vmem [shape: f32[3,3,128], index: 5, kind: input, shape index: {}]   ;;  %s3748_s6 = inlined_call_operand.vmem [shape: f32[1,128], index: 6, kind: input, shape index: {}]   ;;  %s3749_s7 = inlined_call_operand.vmem [shape: bf16[128,4], index: 7, kind: input, shape index: {}]   ;;  %s3750_s8 = inlined_call_operand.vmem [shape: f32[1,4], index: 8, kind: input, shape index: {}]   ;;  %s3751_s9 = inlined_call_operand.vmem [shape: f32[2,16,16,4], index: 9, kind: output, shape index: {}]  }
   0x1   :  { %s2571_s11 = smov 0   ;;  %s2573_s12 = smov 0  }
   0x2   :  { %s2575_s13 = smov 0  }
   0x3 LB: > { %s28_s14 = sadd.s32 1, %s2505_s11  ;;  %s31_s15 = sadd.s32 1, %s2509_s12  ;;  %s2513_s13 = sphi %s2575_s13, %s19_s13   ;;  %s2509_s12 = sphi %s2573_s12, %s3880_s12   ;;  %s2505_s11 = sphi %s2571_s11, %s3879_s11   ;;  %s2501_s10 = sphi %s2569_s10, %s3878_s10   ;;  %s2497_s30 = sphi %s2567_s30, %s3877_s30  }
   0x4   : > { %p29_p0 = scmp.ge.s32.totalorder %s28_s14, 2  ;;  %p2196_p1 = scmp.ge.s32.totalorder %s2513_s13, 1 }
   0x5   : > { %p373_p2 = scmp.lt.s32.totalorder %s2513_s13, 5 }
   0x6   : > { %s3882_s14 = smov (%p29_p0, %s28_s14), 0  ;;  %s3884_s15 = smov (!%p29_p0, %s31_s15), %s2509_s12 }
   0x7   : > { %p374_p3 = pnand %p2196_p1, %p373_p2  ;;  %p33_p4 = scmp.ge.s32.totalorder %s3884_s15, 2 }
   0x9   : > { %s3886_s15 = smov (%p33_p4, %s3884_s15), 0  ;;  %377 = sbr.rel (%p374_p3) target bundleno = 699 (0x2bb), region = 56 }
   0xe   : > { %v532_v0 = vld [vmem:[%s3745_s3] sm:$0x3]  ;;  %vm571_vm0 = vcmask 1041408   ;;  %s2603_s18 = sshll.u32 %s2497_s30, 3  ;;  %p446_p5 = scmp.lt.s32.totalorder %s2501_s10, 1  ;;  %vm540_vm1 = vcmask 31744  }
   0xf   : > { %2352 = vmatprep.subr.msk.bf16.mxu0 %vm571_vm0, %v532_v0  ;;  %v573_v1 = vsel %vm571_vm0, %v532_v0, 0  ;;  %p448_p6 = scmp.lt.s32.totalorder %s2603_s18, 15  ;;  %s2202_s19 = sadd.s32 4294967295, %s2603_s18  ;;  %v2715_v32 = vld [vmem:[%s3746_s4] ss:$0 sm:$0xff] }
  0x10   : > { %2283 = vmatpush3.bf16.msra.mxu0 %v573_v1  ;;  %s3888_s10 = smov (!%p446_p5, %s2501_s10), 1  ;;  %p458_p7 = scmp.gt.s32.totalorder %s2202_s19, 0 }
  0x11   : > { %s449_s20 = scalar_select %p448_p6, %s2603_s18, 15 }
  0x12   : > { %s2608_s21 = sshll.u32 %s3888_s10, 5  ;;  %p2203_p8 = scmp.lt.s32.totalorder %s2202_s19, 15 }
  0x13   : > { %s2198_s22 = sshll.u32 %s449_s20, 1  ;;  %s3890_s19 = smov (!%p458_p7, %s2202_s19), 0 }
  0x14   : > { %s452_s23 = sadd.s32 %s2608_s21, %s2198_s22  ;;  %s3892_s19 = smov (!%p2203_p8, %s3890_s19), 15 }
  0x15   : > { %s2200_s24 = sshll.u32 %s452_s23, 3  ;;  %s2208_s10 = sshll.u32 %s3892_s19, 1 }
  0x16   : > { %s2614_s27 = scalar_lea.vmem %s3751_s9, %s2200_s24  ;;  %s2619_s16 = scalar_lea.vmem %s3742_s0, %s2200_s24 }
  0x17   : > { %s466_s17 = sadd.s32 %s2208_s10, %s2608_s21  ;;  %v2623_v2 = vld [vmem:[%s2619_s16] sm:$0xff]  ;;  %v2626_v3 = vld [vmem:[%s2619_s16 + $0x8] sm:$0xff]  ;;  %v2629_v4 = vld [vmem:[%s2619_s16 + $0x10] sm:$0xff]  ;;  %s2254_s19 = sadd.s32 8, %s2603_s18 }
  0x18   : > { %3784 = vst [vmem:[#allocation3_spill] sm:$0xff] %v2623_v2  ;;  %3785 = vst [vmem:[#allocation4_spill] sm:$0xff] %v2626_v3  ;;  %s2210_s20 = sshll.u32 %s466_s17, 3  ;;  %v2632_v5 = vld [vmem:[%s2619_s16 + $0x18] sm:$0xff]  ;;  %v523_v8 = vpack.c.bf16 %v2626_v3, %v2623_v2  ;;  %p2644_p9 = scmp.lt.s32.totalorder %s2254_s19, 15  ;;  %v2650_v11 = vld [vmem:[%s2619_s16 + $0x20] sm:$0xff] }
  0x19   : > { %3786 = vst [vmem:[#allocation5_spill] sm:$0xff] %v2629_v4  ;;  %3787 = vst [vmem:[#allocation6_spill] sm:$0xff] %v2632_v5  ;;  %s468_s24 = scalar_lea.vmem %s3743_s1, %s2210_s20  ;;  %v524_v10 = vpack.c.bf16 %v2632_v5, %v2629_v4  ;;  %v2653_v12 = vld [vmem:[%s2619_s16 + $0x28] sm:$0xff]  ;;  %v2656_v13 = vld [vmem:[%s2619_s16 + $0x30] sm:$0xff]  ;;  %p2233_p10 = scmp.ne.s32.totalorder %s2497_s30, 0 }
  0x1a   : > { %v518_v6 = vld [vmem:[%s468_s24] sm:$0xff]  ;;  %v519_v7 = vld [vmem:[%s468_s24 + $0x8] sm:$0xff]  ;;  %3789 = vst [vmem:[#allocation7_spill] sm:$0xff] %v2650_v11  ;;  %3790 = vst [vmem:[#allocation8_spill] sm:$0xff] %v2653_v12  ;;  %v525_v15 = vpack.c.bf16 %v2653_v12, %v2650_v11  ;;  %s3894_s19 = smov (!%p2644_p9, %s2254_s19), 15 }
  0x1b   : > { %v522_v9 = vpack.c.bf16 %v519_v7, %v518_v6  ;;  %3791 = vst [vmem:[#allocation9_spill] sm:$0xff] %v2656_v13  ;;  %v2659_v14 = vld [vmem:[%s2619_s16 + $0x38] sm:$0xff]  ;;  %s3896_s19 = smov (!%p2644_p9, %s3894_s19), 15  ;;  %v2672_v17 = vld [vmem:[%s2619_s16 + $0x40] sm:$0xff]  ;;  %v2675_v18 = vld [vmem:[%s2619_s16 + $0x48] sm:$0xff] }
  0x1c   : > { %3792 = vst [vmem:[#allocation10_spill] sm:$0xff] %v2659_v14  ;;  %v526_v16 = vpack.c.bf16 %v2659_v14, %v2656_v13  ;;  %3793 = vst [vmem:[#allocation11_spill] sm:$0xff] %v2672_v17  ;;  %v2678_v19 = vld [vmem:[%s2619_s16 + $0x50] sm:$0xff]  ;;  %v2681_v20 = vld [vmem:[%s2619_s16 + $0x58] sm:$0xff]  ;;  %v527_v21 = vpack.c.bf16 %v2675_v18, %v2672_v17  ;;  %s2215_s18 = sshll.u32 %s3896_s19, 1 }
  0x1d   : > { %2284 = vmatprep.mubr.msk.bf16.mxu0 %vm540_vm1, %v522_v9  ;;  %3794 = vst [vmem:[#allocation12_spill] sm:$0xff] %v2675_v18  ;;  %3795 = vst [vmem:[#allocation13_spill] sm:$0xff] %v2678_v19  ;;  %v528_v22 = vpack.c.bf16 %v2681_v20, %v2678_v19  ;;  %s483_s26 = sadd.s32 %s2215_s18, %s2608_s21  ;;  %v2691_v23 = vld [vmem:[%s2619_s16 + $0x60] sm:$0xff]  ;;  %v2694_v24 = vld [vmem:[%s2619_s16 + $0x68] sm:$0xff] }
  0x1e   : > { %2285 = vmatmul.mubr.msk.bf16.vlgmr.msra.gmra.mxu0 %vm540_vm1, %v523_v8  ;;  %3796 = vst [vmem:[#allocation14_spill] sm:$0xff] %v2681_v20  ;;  %3797 = vst [vmem:[#allocation15_spill] sm:$0xff] %v2691_v23  ;;  %v2697_v25 = vld [vmem:[%s2619_s16 + $0x70] sm:$0xff]  ;;  %v2700_v26 = vld [vmem:[%s2619_s16 + $0x78] sm:$0xff]  ;;  %s2217_s28 = sshll.u32 %s483_s26, 3  ;;  %v529_v27 = vpack.c.bf16 %v2694_v24, %v2691_v23 }
  0x1f   : > { %2288 = vmatprep.mubr.msk.bf16.mxu0 %vm540_vm1, %v524_v10  ;;  %3798 = vst [vmem:[#allocation16_spill] sm:$0xff] %v2694_v24  ;;  %3799 = vst [vmem:[#allocation17_spill] sm:$0xff] %v2697_v25  ;;  %v530_v28 = vpack.c.bf16 %v2700_v26, %v2697_v25  ;;  %s485_s10 = scalar_lea.vmem %s3744_s2, %s2217_s28 }
  0x20   : > { %3800 = vst [vmem:[#allocation18_spill] sm:$0xff] %v2700_v26  ;;  %v520_v29 = vld [vmem:[%s485_s10] sm:$0xff]  ;;  %v521_v30 = vld [vmem:[%s485_s10 + $0x8] sm:$0xff] }
  0x21   : > { %v531_v31 = vpack.c.bf16 %v521_v30, %v520_v29 }
  0x26   : > { %2289 = vmatmul.mubr.msk.bf16.gmra.mxu0 %vm540_vm1, %v525_v15 }
  0x27   : > { %2292 = vmatprep.mubr.msk.bf16.mxu0 %vm540_vm1, %v526_v16 }
  0x2e   : > { %2293 = vmatmul.mubr.msk.bf16.gmra.mxu0 %vm540_vm1, %v527_v21 }
  0x2f   : > { %2296 = vmatprep.mubr.msk.bf16.mxu0 %vm540_vm1, %v528_v22 }
  0x36   : > { %2297 = vmatmul.mubr.msk.bf16.gmra.mxu0 %vm540_vm1, %v529_v27 }
  0x37   : > { %2300 = vmatprep.mubr.msk.bf16.mxu0 %vm540_vm1, %v530_v28 }
  0x3e   : > { %2301 = vmatmul.mubr.msk.bf16.gmra.mxu0 %vm540_vm1, %v531_v31 }
  0xde   : > { %v2286_v33 = vpop.f32.mrf.mxu0 }
  0xdf   : > { %v618_v34 = vadd.f32 %v2286_v33, %v2715_v32 }
  0xe0   : > { %v609_v35 = vpop.f32.mrf.mxu0 }
  0xe1   : > { %v710_v36 = vmul.f32 0.044715, %v618_v34  ;;  %v2719_v37 = vadd.f32 %v2715_v32, %v609_v35 }
  0xe2   : > { %v2287_v38 = vpop.f32.mrf.mxu0 }
  0xe3   : > { %v730_v39 = vmul.f32 %v710_v36, %v618_v34  ;;  %v708_v40 = vmul.f32 0.044715, %v2719_v37  ;;  %v2723_v41 = vadd.f32 %v2287_v38, %v2715_v32 }
  0xe4   : > { %v612_v42 = vpop.f32.mrf.mxu0 }
  0xe5   : > { %v750_v43 = vmul.f32 %v730_v39, %v618_v34  ;;  %v728_v44 = vmul.f32 %v708_v40, %v2719_v37  ;;  %v711_v45 = vmul.f32 0.044715, %v2723_v41  ;;  %v2728_v46 = vadd.f32 %v2715_v32, %v612_v42 }
  0xe6   : > { %v2290_v47 = vpop.f32.mrf.mxu0 }
  0xe7   : > { %v770_v48 = vadd.f32 %v750_v43, %v618_v34  ;;  %v748_v49 = vmul.f32 %v728_v44, %v2719_v37  ;;  %v731_v50 = vmul.f32 %v711_v45, %v2723_v41  ;;  %v2733_v51 = vadd.f32 %v2290_v47, %v2715_v32 }
  0xe8   : > { %v709_v52 = vmul.f32 0.044715, %v2728_v46  ;;  %v625_v53 = vpop.f32.mrf.mxu0 }
  0xe9   : > { %v790_v54 = vmul.f32 0.7978846, %v770_v48  ;;  %v768_v55 = vadd.f32 %v748_v49, %v2719_v37  ;;  %v751_v56 = vmul.f32 %v731_v50, %v2723_v41  ;;  %v714_v58 = vmul.f32 0.044715, %v2733_v51 }
  0xea   : > { %v729_v57 = vmul.f32 %v709_v52, %v2728_v46  ;;  %v2741_v59 = vadd.f32 %v2715_v32, %v625_v53  ;;  %v2291_v60 = vpop.f32.mrf.mxu0  ;;  %v690_v49 = vmul.f32 0.5, %v618_v34 }
  0xeb   : > { %2395 = vtanh.f32 %v790_v54  ;;  %v788_v61 = vmul.f32 0.7978846, %v768_v55  ;;  %v771_v62 = vadd.f32 %v751_v56, %v2723_v41  ;;  %v2745_v63 = vadd.f32 %v2291_v60, %v2715_v32 }
  0xec   : > { %v749_v0 = vmul.f32 %v729_v57, %v2728_v46  ;;  %v734_v1 = vmul.f32 %v714_v58, %v2733_v51  ;;  %v712_v6 = vmul.f32 0.044715, %v2741_v59  ;;  %v628_v7 = vpop.f32.mrf.mxu0  ;;  %v688_v54 = vmul.f32 0.5, %v2719_v37 }
  0xed   : > { %2397 = vtanh.f32 %v788_v61  ;;  %v791_v8 = vmul.f32 0.7978846, %v771_v62  ;;  %v715_v9 = vmul.f32 0.044715, %v2745_v63  ;;  %v2755_v21 = vadd.f32 %v2715_v32, %v628_v7 }
  0xee   : > { %v769_v10 = vadd.f32 %v749_v0, %v2728_v46  ;;  %v754_v15 = vmul.f32 %v734_v1, %v2733_v51  ;;  %v732_v16 = vmul.f32 %v712_v6, %v2741_v59  ;;  %v2294_v22 = vpop.f32.mrf.mxu0  ;;  %v691_v6 = vmul.f32 0.5, %v2723_v41 }
  0xef   : > { %2399 = vtanh.f32 %v791_v8  ;;  %v735_v27 = vmul.f32 %v715_v9, %v2745_v63  ;;  %v2759_v28 = vadd.f32 %v2294_v22, %v2715_v32  ;;  %v713_v36 = vmul.f32 0.044715, %v2755_v21 }
  0xf0   : > { %v789_v29 = vmul.f32 0.7978846, %v769_v10  ;;  %v774_v30 = vadd.f32 %v754_v15, %v2733_v51  ;;  %v752_v31 = vmul.f32 %v732_v16, %v2741_v59  ;;  %v641_v33 = vpop.f32.mrf.mxu0  ;;  %v689_v16 = vmul.f32 0.5, %v2728_v46 }
  0xf1   : > { %v755_v35 = vmul.f32 %v735_v27, %v2745_v63  ;;  %v718_v38 = vmul.f32 0.044715, %v2759_v28  ;;  %v2768_v42 = vadd.f32 %v2715_v32, %v641_v33  ;;  %v733_v45 = vmul.f32 %v713_v36, %v2755_v21 }
  0xf2   : > { %2401 = vtanh.f32 %v789_v29  ;;  %v794_v39 = vmul.f32 0.7978846, %v774_v30  ;;  %v772_v40 = vadd.f32 %v752_v31, %v2741_v59  ;;  %v2295_v43 = vpop.f32.mrf.mxu0 }
  0xf3   : > { %v775_v44 = vadd.f32 %v755_v35, %v2745_v63  ;;  %v738_v47 = vmul.f32 %v718_v38, %v2759_v28  ;;  %v2774_v48 = vadd.f32 %v2295_v43, %v2715_v32  ;;  %v716_v52 = vmul.f32 0.044715, %v2768_v42 }
  0xf4   : > { %2403 = vtanh.f32 %v794_v39  ;;  %v792_v50 = vmul.f32 0.7978846, %v772_v40  ;;  %v644_v53 = vpop.f32.mrf.mxu0  ;;  %v753_v56 = vmul.f32 %v733_v45, %v2755_v21 }
  0xf5   : > { %v795_v55 = vmul.f32 0.7978846, %v775_v44  ;;  %v758_v57 = vmul.f32 %v738_v47, %v2759_v28  ;;  %v736_v58 = vmul.f32 %v716_v52, %v2768_v42  ;;  %v719_v60 = vmul.f32 0.044715, %v2774_v48 }
  0xf6   : > { %2405 = vtanh.f32 %v792_v50  ;;  %v2783_v61 = vadd.f32 %v2715_v32, %v644_v53  ;;  %v2298_v34 = vpop.f32.mrf.mxu0  ;;  %v773_v62 = vadd.f32 %v753_v56, %v2755_v21  ;;  %v694_v52 = vmul.f32 0.5, %v2733_v51 }
  0xf7   : > { %2407 = vtanh.f32 %v795_v55  ;;  %v778_v0 = vadd.f32 %v758_v57, %v2759_v28  ;;  %v2788_v37 = vadd.f32 %v2298_v34, %v2715_v32  ;;  %v756_v7 = vmul.f32 %v736_v58, %v2768_v42 }
  0xf8   : > { %v2396_v1 = vpop.eup %2395  ;;  %v739_v8 = vmul.f32 %v719_v60, %v2774_v48  ;;  %v717_v9 = vmul.f32 0.044715, %v2783_v61  ;;  %v657_v10 = vpop.f32.mrf.mxu0  ;;  %v793_v22 = vmul.f32 0.7978846, %v773_v62 }
  0xf9   : > { %v830_v15 = vadd.f32 1.0, %v2396_v1  ;;  %v798_v27 = vmul.f32 0.7978846, %v778_v0  ;;  %v776_v30 = vadd.f32 %v756_v7, %v2768_v42  ;;  %v722_v41 = vmul.f32 0.044715, %v2788_v37 }
  0xfa   : > { %v2398_v29 = vpop.eup %2397  ;;  %v759_v31 = vmul.f32 %v739_v8, %v2774_v48  ;;  %v737_v33 = vmul.f32 %v717_v9, %v2783_v61  ;;  %v2299_v35 = vpop.f32.mrf.mxu0  ;;  %2409 = vtanh.f32 %v793_v22  ;;  %v2800_v39 = vadd.f32 %v2715_v32, %v657_v10 }
  0xfb   : > { %v850_v36 = vmul.f32 %v830_v15, %v690_v49  ;;  %v828_v38 = vadd.f32 1.0, %v2398_v29  ;;  %2411 = vtanh.f32 %v798_v27  ;;  %v796_v46 = vmul.f32 0.7978846, %v776_v30 }
  0xfc   : > { %v2400_v40 = vpop.eup %2399  ;;  %v779_v43 = vadd.f32 %v759_v31, %v2774_v48  ;;  %v757_v44 = vmul.f32 %v737_v33, %v2783_v61  ;;  %v660_v45 = vpop.f32.mrf.mxu0  ;;  %v742_v49 = vmul.f32 %v722_v41, %v2788_v37  ;;  %v720_v56 = vmul.f32 0.044715, %v2800_v39 }
  0xfd   : > { %870 = vst [vmem:[#allocation2 + $0x50] sm:$0xff] %v850_v36  ;;  %v848_v47 = vmul.f32 %v828_v38, %v688_v54  ;;  %v831_v50 = vadd.f32 1.0, %v2400_v40  ;;  %2413 = vtanh.f32 %v796_v46  ;;  %v2810_v62 = vadd.f32 %v2299_v35, %v2715_v32 }
  0xfe   : > { %v799_v53 = vmul.f32 0.7978846, %v779_v43  ;;  %v777_v55 = vadd.f32 %v757_v44, %v2783_v61  ;;  %v2302_v57 = vpop.f32.mrf.mxu0  ;;  %v762_v34 = vmul.f32 %v742_v49, %v2788_v37  ;;  %v2813_v54 = vadd.f32 %v2715_v32, %v660_v45 }
  0xff   : > { %v2402_v58 = vpop.eup %2401  ;;  %868 = vst [vmem:[#allocation2] sm:$0xff] %v848_v47  ;;  %v851_v60 = vmul.f32 %v831_v50, %v691_v6  ;;  %v740_v1 = vmul.f32 %v720_v56, %v2800_v39  ;;  %v692_v9 = vmul.f32 0.5, %v2741_v59  ;;  %v695_v6 = vmul.f32 0.5, %v2745_v63 }
 0x100   : > { %v829_v51 = vadd.f32 1.0, %v2402_v58  ;;  %2415 = vtanh.f32 %v799_v53  ;;  %v797_v0 = vmul.f32 0.7978846, %v777_v55  ;;  %v673_v7 = vpop.f32.mrf.mxu0  ;;  %v782_v10 = vadd.f32 %v762_v34, %v2788_v37 }
 0x101   : > { %v2404_v8 = vpop.eup %2403  ;;  %871 = vst [vmem:[#allocation2 + $0x18] sm:$0xff] %v851_v60  ;;  %v723_v15 = vmul.f32 0.044715, %v2810_v62  ;;  %v760_v29 = vmul.f32 %v740_v1, %v2800_v39  ;;  %v721_v35 = vmul.f32 0.044715, %v2813_v54  ;;  %v2824_v59 = vadd.f32 %v2302_v57, %v2715_v32 }
 0x102   : > { %v849_v22 = vmul.f32 %v829_v51, %v689_v16  ;;  %v834_v27 = vadd.f32 1.0, %v2404_v8  ;;  %2417 = vtanh.f32 %v797_v0  ;;  %v2303_v30 = vpop.f32.mrf.mxu0  ;;  %v802_v33 = vmul.f32 0.7978846, %v782_v10 }
 0x103   : > { %v2406_v31 = vpop.eup %2405  ;;  %v743_v41 = vmul.f32 %v723_v15, %v2810_v62  ;;  %v780_v16 = vadd.f32 %v760_v29, %v2800_v39  ;;  %v2828_v40 = vadd.f32 %v2715_v32, %v673_v7  ;;  %v741_v44 = vmul.f32 %v721_v35, %v2813_v54 }
 0x104   : > { %v2408_v63 = vpop.eup %2407  ;;  %869 = vst [vmem:[#allocation2 + $0x38] sm:$0xff] %v849_v22  ;;  %v854_v36 = vmul.f32 %v834_v27, %v694_v52  ;;  %v832_v38 = vadd.f32 1.0, %v2406_v31  ;;  %2419 = vtanh.f32 %v802_v33  ;;  %v693_v47 = vmul.f32 0.5, %v2755_v21  ;;  %v676_v52 = vpop.f32.mrf.mxu0 }
 0x105   : > { %v835_v46 = vadd.f32 1.0, %v2408_v63  ;;  %v763_v43 = vmul.f32 %v743_v41, %v2810_v62  ;;  %v800_v50 = vmul.f32 0.7978846, %v780_v16  ;;  %v726_v49 = vmul.f32 0.044715, %v2824_v59 }
 0x106   : > { %874 = vst [vmem:[#allocation2 + $0x78] sm:$0xff] %v854_v36  ;;  %v852_v45 = vmul.f32 %v832_v38, %v692_v9  ;;  %v698_v55 = vmul.f32 0.5, %v2759_v28  ;;  %v761_v57 = vmul.f32 %v741_v44, %v2813_v54  ;;  %v724_v34 = vmul.f32 0.044715, %v2828_v40 }
 0x107   : > { %v855_v53 = vmul.f32 %v835_v46, %v695_v6  ;;  %v783_v56 = vadd.f32 %v763_v43, %v2810_v62  ;;  %v2410_v58 = vpop.eup %2409  ;;  %2421 = vtanh.f32 %v800_v50  ;;  %v746_v60 = vmul.f32 %v726_v49, %v2824_v59 }
 0x108   : > { %872 = vst [vmem:[#allocation2 + $0x30] sm:$0xff] %v852_v45  ;;  %v2840_v21 = vadd.f32 %v2303_v30, %v2715_v32  ;;  %v2412_v51 = vpop.eup %2411  ;;  %v833_v0 = vadd.f32 1.0, %v2410_v58  ;;  %v781_v28 = vadd.f32 %v761_v57, %v2813_v54  ;;  %v2844_v7 = vadd.f32 %v2715_v32, %v676_v52 }
 0x109   : > { %875 = vst [vmem:[#allocation2 + $0x80] sm:$0xff] %v855_v53  ;;  %v803_v1 = vmul.f32 0.7978846, %v783_v56  ;;  %v838_v8 = vadd.f32 1.0, %v2412_v51  ;;  %v696_v9 = vmul.f32 0.5, %v2768_v42  ;;  %v766_v6 = vmul.f32 %v746_v60, %v2824_v59 }
 0x10a   : > { %v744_v10 = vmul.f32 %v724_v34, %v2828_v40  ;;  %v2414_v15 = vpop.eup %2413  ;;  %v853_v22 = vmul.f32 %v833_v0, %v693_v47  ;;  %v801_v27 = vmul.f32 0.7978846, %v781_v28  ;;  %v727_v29 = vmul.f32 0.044715, %v2840_v21 }
 0x10b   : > { %2423 = vtanh.f32 %v803_v1  ;;  %v858_v30 = vmul.f32 %v838_v8, %v698_v55  ;;  %v836_v31 = vadd.f32 1.0, %v2414_v15  ;;  %v786_v33 = vadd.f32 %v766_v6, %v2824_v59 }
 0x10c   : > { %v764_v32 = vmul.f32 %v744_v10, %v2828_v40  ;;  %873 = vst [vmem:[#allocation2 + $0x68] sm:$0xff] %v853_v22  ;;  %v699_v42 = vmul.f32 0.5, %v2774_v48  ;;  %2425 = vtanh.f32 %v801_v27  ;;  %v747_v35 = vmul.f32 %v727_v29, %v2840_v21 }
 0x10d   : > { %v2416_v41 = vpop.eup %2415  ;;  %v725_v63 = vmul.f32 0.044715, %v2844_v7  ;;  %878 = vst [vmem:[#allocation2 + $0x28] sm:$0xff] %v858_v30  ;;  %v856_v36 = vmul.f32 %v836_v31, %v696_v9  ;;  %v806_v16 = vmul.f32 0.7978846, %v786_v33  ;;  %v697_v44 = vmul.f32 0.5, %v2783_v61 }
 0x10e   : > { %v839_v38 = vadd.f32 1.0, %v2416_v41  ;;  %v784_v46 = vadd.f32 %v764_v32, %v2828_v40  ;;  %v767_v45 = vmul.f32 %v747_v35, %v2840_v21  ;;  %v702_v57 = vmul.f32 0.5, %v2788_v37 }
 0x10f   : > { %v2418_v43 = vpop.eup %2417  ;;  %v745_v47 = vmul.f32 %v725_v63, %v2844_v7  ;;  %876 = vst [vmem:[#allocation2 + $0x8] sm:$0xff] %v856_v36  ;;  %2427 = vtanh.f32 %v806_v16  ;;  %v700_v1 = vmul.f32 0.5, %v2800_v39  ;;  %v703_v6 = vmul.f32 0.5, %v2810_v62 }
 0x110   : > { %v859_v48 = vmul.f32 %v839_v38, %v699_v42  ;;  %v837_v50 = vadd.f32 1.0, %v2418_v43  ;;  %v804_v49 = vmul.f32 0.7978846, %v784_v46  ;;  %v787_v52 = vadd.f32 %v767_v45, %v2840_v21 }
 0x111   : > { %v765_v53 = vmul.f32 %v745_v47, %v2844_v7  ;;  %v2420_v55 = vpop.eup %2419  ;;  %v701_v22 = vmul.f32 0.5, %v2813_v54  ;;  %v706_v31 = vmul.f32 0.5, %v2824_v59  ;;  %v704_v41 = vmul.f32 0.5, %v2828_v40 }
 0x112   : > { %879 = vst [vmem:[#allocation2 + $0x40] sm:$0xff] %v859_v48  ;;  %v857_v56 = vmul.f32 %v837_v50, %v697_v44  ;;  %2429 = vtanh.f32 %v804_v49  ;;  %v842_v61 = vadd.f32 1.0, %v2420_v55  ;;  %v807_v58 = vmul.f32 0.7978846, %v787_v52 }
 0x113   : > { %v785_v60 = vadd.f32 %v765_v53, %v2844_v7  ;;  %v707_v63 = vmul.f32 0.5, %v2840_v21  ;;  %v705_v16 = vmul.f32 0.5, %v2844_v7 }
 0x114   : > { %877 = vst [vmem:[#allocation2 + $0x88] sm:$0xff] %v857_v56  ;;  %v2422_v34 = vpop.eup %2421  ;;  %v862_v51 = vmul.f32 %v842_v61, %v702_v57  ;;  %2431 = vtanh.f32 %v807_v58 }
 0x115   : > { %v805_v0 = vmul.f32 0.7978846, %v785_v60  ;;  %v840_v28 = vadd.f32 1.0, %v2422_v34 }
 0x116   : > { %882 = vst [vmem:[#allocation2 + $0x98] sm:$0xff] %v862_v51 }
 0x117   : > { %2433 = vtanh.f32 %v805_v0  ;;  %v860_v9 = vmul.f32 %v840_v28, %v700_v1 }
 0x118   : > { %v2424_v8 = vpop.eup %2423 }
 0x119   : > { %v843_v10 = vadd.f32 1.0, %v2424_v8  ;;  %v2426_v37 = vpop.eup %2425  ;;  %880 = vst [vmem:[#allocation2 + $0x58] sm:$0xff] %v860_v9 }
 0x11a   : > { %v841_v27 = vadd.f32 1.0, %v2426_v37 }
 0x11b   : > { %v863_v15 = vmul.f32 %v843_v10, %v703_v6 }
 0x11c   : > { %v2428_v29 = vpop.eup %2427  ;;  %v861_v30 = vmul.f32 %v841_v27, %v701_v22 }
 0x11d   : > { %883 = vst [vmem:[#allocation2 + $0x60] sm:$0xff] %v863_v15  ;;  %v846_v39 = vadd.f32 1.0, %v2428_v29 }
 0x11e   : > { %881 = vst [vmem:[#allocation2 + $0x10] sm:$0xff] %v861_v30 }
 0x11f   : > { %v2430_v33 = vpop.eup %2429  ;;  %v866_v32 = vmul.f32 %v846_v39, %v706_v31 }
 0x120   : > { %v844_v42 = vadd.f32 1.0, %v2430_v33 }
 0x121   : > { %v2432_v62 = vpop.eup %2431  ;;  %886 = vst [vmem:[#allocation2 + $0x70] sm:$0xff] %v866_v32 }
 0x122   : > { %v864_v35 = vmul.f32 %v844_v42, %v704_v41  ;;  %v847_v36 = vadd.f32 1.0, %v2432_v62 }
 0x124   : > { %v2434_v54 = vpop.eup %2433  ;;  %884 = vst [vmem:[#allocation2 + $0x20] sm:$0xff] %v864_v35  ;;  %v867_v38 = vmul.f32 %v847_v36, %v707_v63 }
 0x125   : > { %v845_v46 = vadd.f32 1.0, %v2434_v54  ;;  %891 = sbr.rel (%p2233_p10) target bundleno = 300 (0x12c), region = 60 }
 0x126   : > { %887 = vst [vmem:[#allocation2 + $0x90] sm:$0xff] %v867_v38 }
 0x127   : > { %v865_v59 = vmul.f32 %v845_v46, %v705_v16 }
 0x129   : > { %885 = vst [vmem:[#allocation2 + $0x48] sm:$0xff] %v865_v59 }
 0x12a   : > { %v2515_v40 = vmov 0.0  }
 0x12b   : > { %892 = vst [vmem:[#allocation2] sm:$0xff] %v2515_v40  ;;  %893 = vst [vmem:[#allocation2 + $0x38] sm:$0xff] %v2515_v40 }
 0x12c PF: > { %p2234_p11 = scmp.ne.s32.totalorder %s2497_s30, 1 }
 0x12e   : > { %897 = sbr.rel (%p2234_p11) target bundleno = 309 (0x135), region = 64 }
 0x133   : > { %v2516_v21 = vmov 0.0  }
 0x134   : > { %898 = vst [vmem:[#allocation2 + $0x70] sm:$0xff] %v2516_v21  ;;  %899 = vst [vmem:[#allocation2 + $0x90] sm:$0xff] %v2516_v21 }
 0x135 PF: > { %v2435_v7 = vld [vmem:[%s3749_s7 + $0x38] sm:$0xff]   ;;  %v920_v43 = vlaneseq  ;;  %v2436_v44 = vld [vmem:[%s3749_s7 + $0x30] sm:$0xff]   ;;  %v2437_v47 = vld [vmem:[%s3749_s7 + $0x28] sm:$0xff]  }
 0x136   : > { %2336 = vmatprep.subr.bf16.mxu1 %v2435_v7  ;;  %2304 = vmatprep.subr.bf16.mxu0 %v2435_v7  ;;  %v2438_v52 = vld [vmem:[%s3749_s7 + $0x20] sm:$0xff]   ;;  %v2894_v57 = vld [vmem:[#allocation2 + $0x18] sm:$0xff]  ;;  %v2898_v58 = vld [vmem:[#allocation2 + $0x68] sm:$0xff] }
 0x137   : > { %v2878_v45 = vshrl.u32 %v920_v43, 7  ;;  %2344 = vmatpush3.bf16.msra.mxu1 %v2435_v7  ;;  %2305 = vmatpush3.bf16.msra.mxu0 %v2435_v7  ;;  %v2896_v61 = vld [vmem:[#allocation2 + $0x78] sm:$0xff]  ;;  %v2900_v60 = vld [vmem:[#allocation2 + $0x80] sm:$0xff]  ;;  %v2902_v34 = vld [vmem:[#allocation2 + $0x88] sm:$0xff]  ;;  %v3753_v27 = vrot.slane %v2894_v57, 7  ;;  %v1206_v31 = vrot.slane %v2898_v58, 7 }
 0x138   : > { %2337 = vmatprep.subr.bf16.mxu1 %v2436_v44  ;;  %2306 = vmatprep.subr.bf16.mxu0 %v2436_v44  ;;  %v2904_v0 = vld [vmem:[#allocation2 + $0x30] sm:$0xff]  ;;  %v2906_v1 = vld [vmem:[#allocation2 + $0x28] sm:$0xff]  ;;  %v2439_v10 = vld [vmem:[%s3749_s7 + $0x18] sm:$0xff]   ;;  %v1207_v29 = vrot.slane %v2896_v61, 7  ;;  %v1208_v39 = vrot.slane %v2900_v60, 7  ;;  %v1210_v32 = vrot.slane %v2902_v34, 7 }
 0x139   : > { %v925_v48 = vadd.s32 32, %v2878_v45  ;;  %v926_v50 = vadd.s32 40, %v2878_v45  ;;  %v927_v49 = vadd.s32 48, %v2878_v45  ;;  %v928_v53 = vadd.s32 56, %v2878_v45  ;;  %v2912_v37 = vld [vmem:[#allocation2 + $0x8] sm:$0xff]  ;;  %v2917_v30 = vld [vmem:[#allocation2 + $0x40] sm:$0xff] }
 0x13a   : > { %v929_v55 = vadd.s32 64, %v2878_v45  ;;  %v2892_v56 = vadd.s32 72, %v2878_v45  ;;  %v931_v28 = vadd.s32 80, %v2878_v45  ;;  %v1209_v33 = vrot.slane %v2912_v37, 7  ;;  %v2440_v38 = vld [vmem:[%s3749_s7 + $0x10] sm:$0xff]   ;;  %v3238_v17 = vld [vmem:[#allocation2 + $0x98] sm:$0xff] }
 0x13b   : > { %2345 = vmatpush3.bf16.msra.mxu1 %v2436_v44  ;;  %2307 = vmatpush3.bf16.msra.mxu0 %v2436_v44  ;;  %v973_v8 = vand.u32 15, %v925_v48  ;;  %v980_v9 = vand.u32 15, %v926_v50  ;;  %v987_v6 = vand.u32 15, %v927_v49  ;;  %v994_v15 = vand.u32 15, %v928_v53  ;;  %3820 = vst [vmem:[#allocation21_spill] sm:$0xff] %v3238_v17  ;;  %v3299_v14 = vld [vmem:[#allocation2 + $0x60] sm:$0xff] }
 0x13c   : > { %2338 = vmatprep.subr.bf16.mxu1 %v2437_v47  ;;  %2308 = vmatprep.subr.bf16.mxu0 %v2437_v47  ;;  %v1001_v51 = vand.u32 15, %v929_v55  ;;  %v1008_v22 = vand.u32 15, %v2892_v56  ;;  %v1205_v42 = vrot.slane %v2904_v0, 7  ;;  %v3755_v62 = vrot.slane %v2906_v1, 7 }
 0x13d   : > { %vm1221_vm3 = vcmp.lt.s32.totalorder %v2878_v45, 1  ;;  %v1015_v35 = vand.u32 15, %v931_v28  ;;  %vm2930_vm4 = vcmp.eq.s32.totalorder %v973_v8, 0  ;;  %vm2934_vm5 = vcmp.eq.s32.totalorder %v987_v6, 0  ;;  %v1343_v8 = vld [vmem:[%s3747_s5] sm:$0x7] }
 0x13e   : > { %vm2923_vm2 = vcmp.eq.s32.totalorder %v1001_v51, 0  ;;  %v1233_v54 = vsel %vm1221_vm3, %v1208_v39, %v1209_v33  ;;  %v2946_v46 = vsel %vm1221_vm3, %v1209_v33, %v1210_v32  ;;  %v2950_v59 = vsel %vm1221_vm3, %v1207_v29, %v1208_v39  ;;  %v3015_v39 = vld [vmem:[%s3747_s5 + $0x4] sm:$0x7] }
 0x13f   : > { %2346 = vmatpush3.bf16.msra.mxu1 %v2437_v47  ;;  %2309 = vmatpush3.bf16.msra.mxu0 %v2437_v47  ;;  %vm2952_vm6 = vcmp.eq.s32.totalorder %v980_v9, 15  ;;  %v2960_v21 = vsel %vm1221_vm3, %v1210_v32, %v3755_v62  ;;  %v1235_v7 = vsel %vm1221_vm3, %v1206_v31, %v1207_v29  ;;  %v2966_v43 = vsel %vm2923_vm2, 0.0, %v1233_v54 }
 0x140   : > { %2339 = vmatprep.subr.bf16.mxu1 %v2438_v52  ;;  %2310 = vmatprep.subr.bf16.mxu0 %v2438_v52  ;;  %vm2968_vm7 = vcmp.eq.s32.totalorder %v994_v15, 15  ;;  %v2974_v47 = vsel %vm1221_vm3, %v1205_v42, %v1206_v31  ;;  %v1237_v48 = vsel %vm1221_vm3, %v3753_v27, %v1205_v42  ;;  %v3752_v50 = vrot.slane %v2904_v0, 1 }
 0x141   : > { %v1287_v49 = vrot.slane %v2898_v58, 1  ;;  %v1288_v53 = vrot.slane %v2896_v61, 1  ;;  %v1289_v55 = vrot.slane %v2900_v60, 1  ;;  %v1290_v56 = vrot.slane %v2912_v37, 1 }
 0x142   : > { %v1291_v51 = vrot.slane %v2902_v34, 1  ;;  %v3754_v28 = vrot.slane %v2906_v1, 1  ;;  %vm1302_vm8 = vcmp.lt.s32.totalorder %v2878_v45, 7  ;;  %v2995_v9 = vsub.s32 0, %v2878_v45 }
 0x143   : > { %2347 = vmatpush3.bf16.msra.mxu1 %v2438_v52  ;;  %2311 = vmatpush3.bf16.msra.mxu0 %v2438_v52  ;;  %v2441_v52 = vld [vmem:[%s3749_s7 + $0x8] sm:$0xff]   ;;  %v2998_v6 = vsub.s32 1, %v2878_v45  ;;  %vm3004_vm9 = vcmp.eq.s32.totalorder %v1008_v22, 15  ;;  %v1314_v29 = vsel %vm1302_vm8, %v1289_v55, %v1290_v56  ;;  %v1316_v31 = vsel %vm1302_vm8, %v1287_v49, %v1288_v53 }
 0x144   : > { %2340 = vmatprep.subr.bf16.mxu1 %v2439_v10  ;;  %2312 = vmatprep.subr.bf16.mxu0 %v2439_v10  ;;  %vm3017_vm10 = vcmp.eq.s32.totalorder %v1015_v35, 0  ;;  %v3023_v22 = vsel %vm2930_vm4, 0.0, %v1237_v48  ;;  %v1312_v32 = vsel %vm1302_vm8, %v1291_v51, %v3754_v28  ;;  %v3031_v41 = vsel %vm1302_vm8, %v1290_v56, %v1291_v51 }
 0x145   : > { %v3035_v42 = vsel %vm1302_vm8, %v1288_v53, %v1289_v55  ;;  %v3041_v35 = vsel %vm1302_vm8, %v3752_v50, %v1287_v49  ;;  %v3045_v63 = vsel %vm2952_vm6, 0.0, %v1316_v31  ;;  %v3048_v36 = vrot.slane %v1343_v8, %v2995_v9 }
 0x146   : > { %3815 = vst [vmem:[#allocation19_spill] sm:$0xff] %v3035_v42  ;;  %v3051_v54 = vrot.slane %v1343_v8, %v2998_v6  ;;  %v3062_v40 = vsel %vm3004_vm9, 0.0, %v1312_v32  ;;  %v3065_v48 = vsub.s32 2, %v2878_v45  ;;  %v3069_v49 = vrot.slane %v3015_v39, %v2995_v9 }
 0x147   : > { %2348 = vmatpush3.bf16.msra.mxu1 %v2439_v10  ;;  %2313 = vmatpush3.bf16.msra.mxu0 %v2439_v10  ;;  %v3002_v10 = vsel %vm2934_vm5, 0.0, %v1235_v7  ;;  %v3058_v7 = vsel %vm2968_vm7, 0.0, %v1314_v29  ;;  %v1354_v53 = vmul.f32 %v3048_v36, %v3023_v22  ;;  %v1355_v55 = vmul.f32 %v3048_v36, %v2974_v47 }
 0x148   : > { %2341 = vmatprep.subr.bf16.mxu1 %v2440_v38  ;;  %2314 = vmatprep.subr.bf16.mxu0 %v2440_v38  ;;  %3816 = vst [vmem:[#allocation20_spill] sm:$0xff] %v3058_v7  ;;  %v1356_v44 = vmul.f32 %v3048_v36, %v3002_v10  ;;  %v1357_v56 = vmul.f32 %v3048_v36, %v2950_v59  ;;  %v3817_v4 = vrot.slane %v2917_v30, 7  ;;  %v3818_v18 = vrot.slane %v2906_v1, 7 }
 0x149   : > { %v1358_v51 = vmul.f32 %v3048_v36, %v2966_v43  ;;  %v1359_v15 = vmul.f32 %v3048_v36, %v2946_v46  ;;  %v1390_v29 = vmul.f32 %v3051_v54, %v2904_v0  ;;  %v1391_v31 = vmul.f32 %v3051_v54, %v2898_v58 }
 0x14a   : > { %v1392_v32 = vmul.f32 %v3051_v54, %v2896_v61  ;;  %v1393_v50 = vmul.f32 %v3051_v54, %v2900_v60  ;;  %v1394_v27 = vmul.f32 %v3051_v54, %v2912_v37  ;;  %v1395_v28 = vmul.f32 %v3051_v54, %v2902_v34 }
 0x14b   : > { %2349 = vmatpush3.bf16.msra.mxu1 %v2440_v38  ;;  %2315 = vmatpush3.bf16.msra.mxu0 %v2440_v38  ;;  %v2442_v38 = vld [vmem:[%s3749_s7] sm:$0xff]   ;;  %v1406_v62 = vadd.f32 %v1390_v29, %v1354_v53  ;;  %v1407_v16 = vadd.f32 %v1391_v31, %v1355_v55  ;;  %v3096_v24 = vrot.slane %v1343_v8, %v3065_v48 }
 0x14c   : > { %2342 = vmatprep.subr.bf16.mxu1 %v2441_v52  ;;  %2316 = vmatprep.subr.bf16.mxu0 %v2441_v52  ;;  %v3100_v26 = vrot.slane %v3015_v39, %v2998_v6  ;;  %v1408_v23 = vadd.f32 %v1392_v32, %v1356_v44  ;;  %v1409_v25 = vadd.f32 %v1393_v50, %v1357_v56 }
 0x14d   : > { %v1410_v3 = vadd.f32 %v1394_v27, %v1358_v51  ;;  %v1462_v5 = vmul.f32 %v3069_v49, %v3002_v10  ;;  %v1426_v2 = vmul.f32 %v3096_v24, %v3041_v35  ;;  %v1427_v53 = vmul.f32 %v3096_v24, %v3045_v63  ;;  %v1345_v27 = vld [vmem:[%s3747_s5 + $0x8] sm:$0x7] }
 0x14e   : > { %v1428_v8 = vmul.f32 %v3096_v24, %v3035_v42  ;;  %v1429_v55 = vmul.f32 %v3096_v24, %v3058_v7  ;;  %v1411_v50 = vadd.f32 %v1395_v28, %v1359_v15  ;;  %v1431_v44 = vmul.f32 %v3096_v24, %v3062_v40 }
 0x14f   : > { %2350 = vmatpush3.bf16.msra.mxu1 %v2441_v52  ;;  %2317 = vmatpush3.bf16.msra.mxu0 %v2441_v52  ;;  %v1430_v52 = vmul.f32 %v3096_v24, %v3031_v41  ;;  %v1463_v56 = vmul.f32 %v3069_v49, %v2950_v59  ;;  %v1442_v51 = vadd.f32 %v1426_v2, %v1406_v62  ;;  %v1252_v15 = vsel %vm3017_vm10, 0.0, %v2960_v21 }
 0x150   : > { %2343 = vmatprep.subr.bf16.mxu1 %v2442_v38  ;;  %2318 = vmatprep.subr.bf16.mxu0 %v2442_v38  ;;  %v1443_v29 = vadd.f32 %v1427_v53, %v1407_v16  ;;  %v1444_v31 = vadd.f32 %v1428_v8, %v1408_v23  ;;  %v1464_v32 = vmul.f32 %v3069_v49, %v2966_v43 }
 0x151   : > { %v3129_v28 = vsel %vm1221_vm3, %v3818_v18, %v3817_v4  ;;  %v1445_v20 = vadd.f32 %v1429_v55, %v1409_v25  ;;  %v1465_v2 = vmul.f32 %v3069_v49, %v2946_v46  ;;  %v1478_v23 = vadd.f32 %v1462_v5, %v1442_v51 }
 0x152   : > { %v1479_v62 = vadd.f32 %v1463_v56, %v1443_v29  ;;  %v3137_v16 = vrot.slane %v1345_v27, %v2995_v9  ;;  %v3140_v53 = vrot.slane %v1345_v27, %v2998_v6  ;;  %v1446_v8 = vadd.f32 %v1430_v52, %v1410_v3 }
 0x153   : > { %2351 = vmatpush3.bf16.msra.mxu1 %v2442_v38  ;;  %2319 = vmatpush3.bf16.msra.mxu0 %v2442_v38  ;;  %v1466_v4 = vmul.f32 %v3069_v49, %v1252_v15  ;;  %v1498_v18 = vmul.f32 %v3100_v26, %v2896_v61  ;;  %v1499_v25 = vmul.f32 %v3100_v26, %v2900_v60 }
 0x154   : > { %v1447_v21 = vadd.f32 %v1431_v44, %v1411_v50  ;;  %v1467_v5 = vmul.f32 %v3069_v49, %v3129_v28  ;;  %v1480_v33 = vadd.f32 %v1464_v32, %v1444_v31  ;;  %v3151_v9 = vrot.slane %v3015_v39, %v3065_v48  ;;  %v3163_v39 = vld [vmem:[#allocation2 + $0x58] sm:$0xff] }
 0x155   : > { %v1481_v6 = vadd.f32 %v1465_v2, %v1445_v20  ;;  %v1500_v3 = vmul.f32 %v3100_v26, %v2912_v37  ;;  %v1514_v38 = vadd.f32 %v1498_v18, %v1478_v23  ;;  %v1515_v55 = vadd.f32 %v1499_v25, %v1479_v62 }
 0x156   : > { %v1534_v52 = vmul.f32 %v3151_v9, %v3035_v42  ;;  %v1535_v50 = vmul.f32 %v3151_v9, %v3058_v7  ;;  %v1570_v44 = vmul.f32 %v3137_v16, %v2966_v43  ;;  %v1571_v56 = vmul.f32 %v3137_v16, %v2946_v46 }
 0x157   : > { %v3165_v20 = vadd.f32 %v1466_v4, %v1446_v8  ;;  %v1501_v51 = vmul.f32 %v3100_v26, %v2902_v34  ;;  %v1606_v29 = vmul.f32 %v3140_v53, %v2912_v37  ;;  %v1607_v31 = vmul.f32 %v3140_v53, %v2902_v34 }
 0x158   : > { %v1550_v32 = vadd.f32 %v1534_v52, %v1514_v38  ;;  %v1551_v2 = vadd.f32 %v1535_v50, %v1515_v55  ;;  %v3174_v43 = vrot.slane %v1345_v27, %v3065_v48  ;;  %v932_v46 = vadd.s32 88, %v2878_v45 }
 0x159   : > { %v1516_v23 = vadd.f32 %v1500_v3, %v1480_v33  ;;  %v1536_v62 = vmul.f32 %v3151_v9, %v3031_v41  ;;  %v1293_v8 = vrot.slane %v2917_v30, 1  ;;  %v3766_v4 = vrot.slane %v3163_v39, 1 }
 0x15a   : > { %v1586_v18 = vadd.f32 %v1570_v44, %v1550_v32  ;;  %v1587_v37 = vadd.f32 %v1571_v56, %v1551_v2  ;;  %v1642_v34 = vmul.f32 %v3174_v43, %v3031_v41  ;;  %v1643_v25 = vmul.f32 %v3174_v43, %v3062_v40 }
 0x15b   : > { %v3185_v48 = vadd.f32 %v1467_v5, %v1447_v21  ;;  %v1517_v27 = vadd.f32 %v1501_v51, %v1481_v6  ;;  %v1537_v33 = vmul.f32 %v3151_v9, %v3062_v40  ;;  %v1022_v3 = vand.u32 15, %v932_v46  ;;  %v3200_v21 = vld [vmem:[%s3748_s6] ss:$0 sm:$0xff] }
 0x15c   : > { %v1622_v38 = vadd.f32 %v1606_v29, %v1586_v18  ;;  %v1623_v55 = vadd.f32 %v1607_v31, %v1587_v37  ;;  %v1310_v52 = vsel %vm1302_vm8, %v1293_v8, %v3766_v4  ;;  %v3819_v50 = vrot.slane %v2906_v1, 1 }
 0x15d   : > { %v1552_v44 = vadd.f32 %v1536_v62, %v1516_v23  ;;  %vm1273_vm11 = vcmp.eq.s32.totalorder %v1022_v3, 15  ;;  %v1360_v40 = vmul.f32 %v3048_v36, %v1252_v15  ;;  %v1396_v5 = vmul.f32 %v3051_v54, %v2906_v1 }
 0x15e   : > { %v1311_v41 = vsel %vm1302_vm8, %v3819_v50, %v1293_v8  ;;  %v1658_v6 = vadd.f32 %v1642_v34, %v1622_v38  ;;  %v1659_v56 = vadd.f32 %v1643_v25, %v1623_v55  ;;  %v1361_v51 = vmul.f32 %v3048_v36, %v3129_v28 }
 0x15f   : > { %v1397_v29 = vmul.f32 %v3051_v54, %v2917_v30  ;;  %v1553_v31 = vadd.f32 %v1537_v33, %v1517_v27  ;;  %v1334_v32 = vsel %vm1273_vm11, 0.0, %v1310_v52  ;;  %v1432_v2 = vmul.f32 %v3096_v24, %v1311_v41 }
 0x160   : > { %v1572_v46 = vmul.f32 %v3137_v16, %v1252_v15  ;;  %v1681_v23 = vadd.f32 %v3200_v21, %v1658_v6  ;;  %v1682_v62 = vadd.f32 %v3200_v21, %v1659_v56  ;;  %v3214_v8 = vmul.f32 %v3151_v9, %v1311_v41 }
 0x161   : > { %v1573_v18 = vmul.f32 %v3137_v16, %v3129_v28  ;;  %v1412_v37 = vadd.f32 %v1396_v5, %v1360_v40  ;;  %v1608_v25 = vmul.f32 %v3140_v53, %v2906_v1  ;;  %v1609_v27 = vmul.f32 %v3140_v53, %v2917_v30 }
 0x162   : > { %v1588_v34 = vadd.f32 %v1572_v46, %v1552_v44  ;;  %v1713_v33 = vmul.f32 0.044715, %v1681_v23  ;;  %v1714_v15 = vmul.f32 0.044715, %v1682_v62  ;;  %v1413_v3 = vadd.f32 %v1397_v29, %v1361_v51  ;;  %v3230_v51 = vld [vmem:[#allocation2 + $0x10] sm:$0xff] }
 0x163   : > { %v1433_v38 = vmul.f32 %v3096_v24, %v1334_v32  ;;  %v1589_v55 = vadd.f32 %v1573_v18, %v1553_v31  ;;  %v1644_v50 = vmul.f32 %v3174_v43, %v1311_v41  ;;  %v1645_v6 = vmul.f32 %v3174_v43, %v1334_v32 }
 0x164   : > { %v1624_v52 = vadd.f32 %v1608_v25, %v1588_v34  ;;  %v1729_v28 = vmul.f32 %v1713_v33, %v1681_v23  ;;  %v1730_v40 = vmul.f32 %v1714_v15, %v1682_v62  ;;  %v933_v44 = vadd.s32 96, %v2878_v45 }
 0x165   : > { %v934_v5 = vadd.s32 104, %v2878_v45  ;;  %v3228_v56 = vmul.f32 %v3151_v9, %v1334_v32  ;;  %v1625_v46 = vadd.f32 %v1609_v27, %v1589_v55  ;;  %v1213_v29 = vrot.slane %v3163_v39, 7 }
 0x166   : > { %v1660_v4 = vadd.f32 %v1644_v50, %v1624_v52  ;;  %v1745_v31 = vmul.f32 %v1729_v28, %v1681_v23  ;;  %v1746_v18 = vmul.f32 %v1730_v40, %v1682_v62  ;;  %v3233_v41 = vadd.f32 %v1432_v2, %v1412_v37 }
 0x167   : > { %v1029_v34 = vand.u32 15, %v933_v44  ;;  %v3235_v25 = vadd.f32 %v1433_v38, %v1413_v3  ;;  %v1661_v33 = vadd.f32 %v1645_v6, %v1625_v46  ;;  %v1036_v32 = vand.u32 15, %v934_v5 }
 0x168   : > { %v1683_v15 = vadd.f32 %v3200_v21, %v1660_v4  ;;  %v3240_v19 = vmul.f32 0.5, %v1681_v23  ;;  %v1761_v27 = vadd.f32 %v1745_v31, %v1681_v23  ;;  %v1762_v55 = vadd.f32 %v1746_v18, %v1682_v62 }
 0x169   : > { %v3770_v52 = vrot.slane %v3230_v51, 7  ;;  %v1684_v50 = vadd.f32 %v3200_v21, %v1661_v33  ;;  %vm1193_vm12 = vcmp.eq.s32.totalorder %v1029_v34, 0  ;;  %v3821_v2 = vrot.slane %v2917_v30, 7 }
 0x16a   : > { %v1715_v28 = vmul.f32 0.044715, %v1683_v15  ;;  %v1777_v3 = vmul.f32 0.7978846, %v1761_v27  ;;  %v1778_v4 = vmul.f32 0.7978846, %v1762_v55  ;;  %v1398_v55 = vmul.f32 %v3051_v54, %v3163_v39 }
 0x16b   : > { %v1229_v37 = vsel %vm1221_vm3, %v3821_v2, %v1213_v29  ;;  %v1295_v38 = vrot.slane %v3230_v51, 1  ;;  %v3769_v6 = vrot.slane %v3238_v17, 1  ;;  %v3250_v40 = vmul.f32 0.5, %v1682_v62 }
 0x16c   : > { %v1716_v23 = vmul.f32 0.044715, %v1684_v50  ;;  %v1731_v44 = vmul.f32 %v1715_v28, %v1683_v15  ;;  %vm1275_vm13 = vcmp.eq.s32.totalorder %v1036_v32, 15  ;;  %2443 = vtanh.f32 %v1777_v3 }
 0x16d   : > { %v1228_v5 = vsel %vm1221_vm3, %v1213_v29, %v3770_v52  ;;  %v1254_v46 = vsel %vm1193_vm12, 0.0, %v1229_v37  ;;  %v1308_v31 = vsel %vm1302_vm8, %v1295_v38, %v3769_v6  ;;  %2445 = vtanh.f32 %v1778_v4 }
 0x16e   : > { %v1732_v18 = vmul.f32 %v1716_v23, %v1684_v50  ;;  %v1747_v34 = vmul.f32 %v1731_v44, %v1683_v15  ;;  %v3822_v62 = vrot.slane %v3163_v39, 1  ;;  %v3264_v32 = vmul.f32 0.5, %v1683_v15 }
 0x16f   : > { %v3266_v27 = vsel %vm1275_vm13, 0.0, %v1308_v31  ;;  %v1362_v29 = vmul.f32 %v3048_v36, %v1254_v46  ;;  %v3271_v28 = vmul.f32 0.5, %v1684_v50  ;;  %v1363_v3 = vmul.f32 %v3048_v36, %v1228_v5 }
 0x170   : > { %v1309_v33 = vsel %vm1302_vm8, %v3822_v62, %v1295_v38  ;;  %v1748_v2 = vmul.f32 %v1732_v18, %v1684_v50  ;;  %v1763_v37 = vadd.f32 %v1747_v34, %v1683_v15  ;;  %v1399_v4 = vmul.f32 %v3051_v54, %v3230_v51 }
 0x171   : > { %v1434_v38 = vmul.f32 %v3096_v24, %v1309_v33  ;;  %v1502_v23 = vmul.f32 %v3100_v26, %v2906_v1  ;;  %v1503_v44 = vmul.f32 %v3100_v26, %v2917_v30  ;;  %v1435_v6 = vmul.f32 %v3096_v24, %v3266_v27 }
 0x172   : > { %v1764_v31 = vadd.f32 %v1748_v2, %v1684_v50  ;;  %v1779_v62 = vmul.f32 0.7978846, %v1763_v37  ;;  %v3284_v15 = vmul.f32 %v3069_v49, %v1254_v46  ;;  %v1414_v18 = vadd.f32 %v1398_v55, %v1362_v29 }
 0x173   : > { %v3287_v34 = vmul.f32 %v3069_v49, %v1228_v5  ;;  %v1518_v52 = vadd.f32 %v1502_v23, %v3165_v20  ;;  %v1519_v12 = vadd.f32 %v1503_v44, %v3185_v48  ;;  %v1574_v30 = vmul.f32 %v3137_v16, %v1254_v46  ;;  %v3301_v20 = vld [vmem:[#allocation2 + $0x20] sm:$0xff] }
 0x174   : > { %v1780_v1 = vmul.f32 0.7978846, %v1764_v31  ;;  %2447 = vtanh.f32 %v1779_v62  ;;  %v1575_v50 = vmul.f32 %v3137_v16, %v1228_v5  ;;  %v1610_v29 = vmul.f32 %v3140_v53, %v3163_v39 }
 0x175   : > { %v1554_v2 = vadd.f32 %v3214_v8, %v1518_v52  ;;  %v1555_v37 = vadd.f32 %v3228_v56, %v1519_v12  ;;  %v1611_v55 = vmul.f32 %v3140_v53, %v3230_v51  ;;  %v1646_v48 = vmul.f32 %v3174_v43, %v1309_v33 }
 0x176   : > { %2449 = vtanh.f32 %v1780_v1  ;;  %v1647_v5 = vmul.f32 %v3174_v43, %v3266_v27  ;;  %v935_v8 = vadd.s32 112, %v2878_v45  ;;  %v936_v56 = vadd.s32 120, %v2878_v45 }
 0x177   : > { %v1590_v52 = vadd.f32 %v1574_v30, %v1554_v2  ;;  %v1591_v12 = vadd.f32 %v1575_v50, %v1555_v37  ;;  %v1215_v46 = vrot.slane %v3238_v17, 7  ;;  %v3777_v44 = vrot.slane %v3299_v14, 7 }
 0x178   : > { %v1043_v23 = vand.u32 15, %v935_v8  ;;  %v1297_v31 = vrot.slane %v3299_v14, 1  ;;  %v1050_v13 = vand.u32 15, %v936_v56  ;;  %v3823_v7 = vrot.slane %v3230_v51, 7 }
 0x179   : > { %v1626_v1 = vadd.f32 %v1610_v29, %v1590_v52  ;;  %v1627_v11 = vadd.f32 %v1611_v55, %v1591_v12  ;;  %v2444_v50 = vpop.eup %2443  ;;  %v1415_v2 = vadd.f32 %v1399_v4, %v1363_v3  ;;  %v1540_v37 = vmul.f32 %v3151_v9, %v1309_v33 }
 0x17a   : > { %v1227_v30 = vsel %vm1221_vm3, %v3823_v7, %v1215_v46  ;;  %vm1195_vm14 = vcmp.eq.s32.totalorder %v1043_v23, 0  ;;  %v3321_v8 = vsel %vm1221_vm3, %v1215_v46, %v3777_v44  ;;  %v2446_v62 = vpop.eup %2445  ;;  %v1809_v29 = vadd.f32 1.0, %v2444_v50 }
 0x17b   : > { %v1662_v55 = vadd.f32 %v1646_v48, %v1626_v1  ;;  %v1663_v52 = vadd.f32 %v1647_v5, %v1627_v11  ;;  %v1256_v12 = vsel %vm1195_vm14, 0.0, %v1227_v30  ;;  %v1810_v56 = vadd.f32 1.0, %v2446_v62 }
 0x17c   : > { %vm3323_vm15 = vcmp.eq.s32.totalorder %v1050_v13, 15  ;;  %v3826_v7 = vrot.slane %v3301_v20, 1  ;;  %v3827_v3 = vrot.slane %v3238_v17, 1  ;;  %v1825_v48 = vmul.f32 %v1809_v29, %v3240_v19 }
 0x17d   : > { %v1685_v11 = vadd.f32 %v3200_v21, %v1662_v55  ;;  %v1686_v13 = vadd.f32 %v3200_v21, %v1663_v52  ;;  %v1364_v5 = vmul.f32 %v3048_v36, %v1256_v12  ;;  %v1826_v46 = vmul.f32 %v1810_v56, %v3250_v40 }
 0x17e   : > { %v1306_v33 = vsel %vm1302_vm8, %v1297_v31, %v3826_v7  ;;  %v3335_v4 = vsel %vm1302_vm8, %v3827_v3, %v1297_v31  ;;  %v1365_v23 = vmul.f32 %v3048_v36, %v3321_v8  ;;  %v1400_v62 = vmul.f32 %v3051_v54, %v3238_v17 }
 0x17f   : > { %v1401_v31 = vmul.f32 %v3051_v54, %v3299_v14  ;;  %v3348_v1 = vadd.f32 %v1434_v38, %v1414_v18  ;;  %v1541_v19 = vmul.f32 %v3151_v9, %v3266_v27  ;;  %v1717_v30 = vmul.f32 0.044715, %v1685_v11 }
 0x180   : > { %v1718_v50 = vmul.f32 0.044715, %v1686_v13  ;;  %v1839_v29 = vpack.c.bf16 %v1826_v46, %v1825_v48  ;;  %v3352_v55 = vadd.f32 %v1435_v6, %v1415_v2  ;;  %v3356_v40 = vsel %vm3323_vm15, 0.0, %v1306_v33 }
 0x181   : > { %3828 = vst [vmem:[#allocation22_spill] sm:$0xff] %v3348_v1  ;;  %v1436_v52 = vmul.f32 %v3096_v24, %v3335_v4  ;;  %v2448_v56 = vpop.eup %2447  ;;  %v3360_v7 = vmul.f32 0.5, %v1685_v11  ;;  %v3362_v38 = vmul.f32 0.5, %v1686_v13  ;;  %v1733_v18 = vmul.f32 %v1717_v30, %v1685_v11 }
 0x182   : > { %3829 = vst [vmem:[#allocation23_spill] sm:$0xff] %v3352_v55  ;;  %v1734_v3 = vmul.f32 %v1718_v50, %v1686_v13  ;;  %2324 = vmatprep.mubr.bf16.mxu1 %v1839_v29  ;;  %v1811_v27 = vadd.f32 1.0, %v2448_v56  ;;  %v1416_v44 = vadd.f32 %v1400_v62, %v1364_v5  ;;  %v3364_v48 = vadd.f32 %v1401_v31, %v1365_v23 }
 0x183   : > { %v1484_v42 = vadd.f32 %v3284_v15, %v3233_v41  ;;  %v2450_v6 = vpop.eup %2449  ;;  %v1749_v2 = vmul.f32 %v1733_v18, %v1685_v11  ;;  %v1485_v46 = vadd.f32 %v3287_v34, %v3235_v25  ;;  %v1504_v55 = vmul.f32 %v3100_v26, %v3163_v39 }
 0x184   : > { %v1750_v33 = vmul.f32 %v1734_v3, %v1686_v13  ;;  %v1812_v1 = vadd.f32 1.0, %v2450_v6  ;;  %v1827_v30 = vmul.f32 %v1811_v27, %v3264_v32  ;;  %v3375_v5 = vmul.f32 %v3096_v24, %v3356_v40  ;;  %v901_v3 = vld [vmem:[#allocation2 + $0x38] sm:$0xff] }
 0x185   : > { %v1505_v23 = vmul.f32 %v3100_v26, %v3230_v51  ;;  %v1765_v41 = vadd.f32 %v1749_v2, %v1685_v11  ;;  %v3380_v62 = vmul.f32 %v3069_v49, %v1256_v12  ;;  %v1520_v31 = vadd.f32 %v1504_v55, %v1484_v42  ;;  %v3399_v42 = vld [vmem:[#allocation2 + $0x90] sm:$0xff] }
 0x186   : > { %v1766_v15 = vadd.f32 %v1750_v33, %v1686_v13  ;;  %v1828_v25 = vmul.f32 %v1812_v1, %v3271_v28  ;;  %v1576_v39 = vmul.f32 %v3137_v16, %v1256_v12  ;;  %v1577_v32 = vmul.f32 %v3137_v16, %v3321_v8  ;;  %v3392_v1 = vld [vmem:[#allocation2] sm:$0xff]  ;;  %3831 = vst [vmem:[#allocation25_spill] sm:$0xff] %v3399_v42 }
 0x187   : > { %v1521_v34 = vadd.f32 %v1505_v23, %v1485_v46  ;;  %v1781_v50 = vmul.f32 0.7978846, %v1765_v41  ;;  %v1556_v56 = vadd.f32 %v1540_v37, %v1520_v31  ;;  %v1612_v51 = vmul.f32 %v3140_v53, %v3238_v17  ;;  %3830 = vst [vmem:[#allocation24_spill] sm:$0xff] %v3392_v1 }
 0x188   : > { %v1782_v29 = vmul.f32 0.7978846, %v1766_v15  ;;  %v1840_v11 = vpack.c.bf16 %v1828_v25, %v1827_v30  ;;  %v1613_v18 = vmul.f32 %v3140_v53, %v3299_v14  ;;  %v1648_v28 = vmul.f32 %v3174_v43, %v3335_v4 }
 0x189   : > { %v1557_v13 = vadd.f32 %v1541_v19, %v1521_v34  ;;  %2451 = vtanh.f32 %v1781_v50  ;;  %v1592_v12 = vadd.f32 %v1576_v39, %v1556_v56  ;;  %v1649_v55 = vmul.f32 %v3174_v43, %v3356_v40  ;;  %v3397_v19 = vld [vmem:[#allocation2 + $0x50] sm:$0xff] }
 0x18a   : > { %v922_v37 = vadd.s32 8, %v2878_v45  ;;  %2325 = vmatmul.mubr.bf16.vlgmr.msra.gmra.mxu1 %v1840_v11  ;;  %2453 = vtanh.f32 %v1782_v29  ;;  %v923_v6 = vadd.s32 16, %v2878_v45  ;;  %v924_v2 = vadd.s32 24, %v2878_v45 }
 0x18b   : > { %v1593_v27 = vadd.f32 %v1577_v32, %v1557_v13  ;;  %v3405_v33 = vmul.f32 %v3069_v49, %v3321_v8  ;;  %v1628_v46 = vadd.f32 %v1612_v51, %v1592_v12  ;;  %v945_v30 = vand.u32 15, %v2878_v45 }
 0x18c   : > { %v1201_v23 = vrot.slane %v3392_v1, 7  ;;  %v952_v15 = vand.u32 15, %v922_v37  ;;  %v959_v31 = vand.u32 15, %v923_v6  ;;  %v1202_v25 = vrot.slane %v901_v3, 7 }
 0x18d   : > { %3832 = vst [vmem:[#allocation26_spill] sm:$0xff] %v3405_v33  ;;  %v1629_v41 = vadd.f32 %v1613_v18, %v1593_v27  ;;  %v1664_v34 = vadd.f32 %v1648_v28, %v1628_v46  ;;  %vm3409_vm0 = vcmp.eq.s32.totalorder %v945_v30, 0  ;;  %v1203_v32 = vrot.slane %v3397_v19, 7 }
 0x18e   : > { %v3779_v50 = vrot.slane %v3399_v42, 7  ;;  %v3415_v8 = vadd.f32 %v1436_v52, %v1416_v44  ;;  %v966_v56 = vand.u32 15, %v924_v2  ;;  %vm1183_vm2 = vcmp.eq.s32.totalorder %v959_v31, 0 }
 0x18f   : > { %v1665_v29 = vadd.f32 %v1649_v55, %v1629_v41  ;;  %v1687_v51 = vadd.f32 %v3200_v21, %v1664_v34  ;;  %v1239_v11 = vsel %vm1221_vm3, %v1202_v25, %v1203_v32  ;;  %v1240_v13 = vsel %vm1221_vm3, %v1201_v23, %v1202_v25 }
 0x190   : > { %3835 = vst [vmem:[#allocation27_spill] sm:$0xff] %v3415_v8  ;;  %v1241_v18 = vsel %vm1221_vm3, %v3779_v50, %v1201_v23  ;;  %v3836_v44 = vrot.slane %v2894_v57, 7  ;;  %vm3433_vm4 = vcmp.eq.s32.totalorder %v952_v15, 15  ;;  %v1244_v27 = vsel %vm1183_vm2, 0.0, %v1239_v11 }
 0x191   : > { %v1688_v28 = vadd.f32 %v3200_v21, %v1665_v29  ;;  %v1242_v12 = vsel %vm3409_vm0, 0.0, %v1241_v18  ;;  %v1719_v37 = vmul.f32 0.044715, %v1687_v51  ;;  %v3778_v6 = vrot.slane %v3392_v1, 1 }
 0x192   : > { %v1238_v52 = vsel %vm1221_vm3, %v1203_v32, %v3836_v44  ;;  %v1283_v2 = vrot.slane %v901_v3, 1  ;;  %vm1265_vm5 = vcmp.eq.s32.totalorder %v966_v56, 15  ;;  %v1284_v30 = vrot.slane %v3397_v19, 1 }
 0x193   : > { %v1720_v46 = vmul.f32 0.044715, %v1688_v28  ;;  %v1285_v23 = vrot.slane %v2894_v57, 1  ;;  %v1735_v41 = vmul.f32 %v1719_v37, %v1687_v51  ;;  %v1350_v31 = vmul.f32 %v3048_v36, %v1242_v12 }
 0x194   : > { %v1321_v15 = vsel %vm1302_vm8, %v3778_v6, %v1283_v2  ;;  %v1351_v25 = vmul.f32 %v3048_v36, %v1240_v13  ;;  %v3839_v39 = vrot.slane %v2904_v0, 1  ;;  %v1320_v56 = vsel %vm1302_vm8, %v1283_v2, %v1284_v30 }
 0x195   : > { %v1736_v34 = vmul.f32 %v1720_v46, %v1688_v28  ;;  %v1319_v29 = vsel %vm1302_vm8, %v1284_v30, %v1285_v23  ;;  %v1751_v11 = vmul.f32 %v1735_v41, %v1687_v51  ;;  %v1324_v18 = vsel %vm3433_vm4, 0.0, %v1320_v56 }
 0x196   : > { %v1318_v32 = vsel %vm1302_vm8, %v1285_v23, %v3839_v39  ;;  %v1352_v12 = vmul.f32 %v3048_v36, %v1244_v27  ;;  %v2452_v13 = vpop.eup %2451  ;;  %v1353_v46 = vmul.f32 %v3048_v36, %v1238_v52  ;;  %v1386_v39 = vmul.f32 %v3051_v54, %v3392_v1 }
 0x197   : > { %v1326_v44 = vsel %vm1265_vm5, 0.0, %v1318_v32  ;;  %v1752_v37 = vmul.f32 %v1736_v34, %v1688_v28  ;;  %v1387_v6 = vmul.f32 %v3051_v54, %v901_v3  ;;  %v2454_v23 = vpop.eup %2453  ;;  %v1813_v50 = vadd.f32 1.0, %v2452_v13 }
 0x198   : > { %v1767_v8 = vadd.f32 %v1751_v11, %v1687_v51  ;;  %v1388_v2 = vmul.f32 %v3051_v54, %v3397_v19  ;;  %v1389_v55 = vmul.f32 %v3051_v54, %v2894_v57  ;;  %v1814_v30 = vadd.f32 1.0, %v2454_v23 }
 0x199   : > { %v1768_v41 = vadd.f32 %v1752_v37, %v1688_v28  ;;  %v1402_v32 = vadd.f32 %v1386_v39, %v1350_v31  ;;  %v1403_v34 = vadd.f32 %v1387_v6, %v1351_v25  ;;  %v1829_v36 = vmul.f32 %v1813_v50, %v3360_v7 }
 0x19a   : > { %v1783_v56 = vmul.f32 0.7978846, %v1767_v8  ;;  %v1404_v42 = vadd.f32 %v1388_v2, %v1352_v12  ;;  %v1405_v1 = vadd.f32 %v1389_v55, %v1353_v46  ;;  %v1830_v3 = vmul.f32 %v1814_v30, %v3362_v38 }
 0x19b   : > { %v1784_v17 = vmul.f32 0.7978846, %v1768_v41  ;;  %v1422_v11 = vmul.f32 %v3096_v24, %v1321_v15  ;;  %v1423_v13 = vmul.f32 %v3096_v24, %v1324_v18  ;;  %v1424_v33 = vmul.f32 %v3096_v24, %v1319_v29 }
 0x19c   : > { %2455 = vtanh.f32 %v1783_v56  ;;  %v1425_v54 = vmul.f32 %v3096_v24, %v1326_v44  ;;  %v1458_v31 = vmul.f32 %v3069_v49, %v1244_v27  ;;  %v1841_v6 = vpack.c.bf16 %v1830_v3, %v1829_v36 }
 0x19d   : > { %2457 = vtanh.f32 %v1784_v17  ;;  %v1438_v7 = vadd.f32 %v1422_v11, %v1402_v32  ;;  %v1439_v50 = vadd.f32 %v1423_v13, %v1403_v34  ;;  %v1703_v8 = vmul.f32 0.5, %v1687_v51  ;;  %v3840_v13 = vld [vmem:[#allocation19_spill] sm:$0xff] }
 0x19e   : > { %v3472_v25 = vmul.f32 0.5, %v1688_v28  ;;  %v1459_v38 = vmul.f32 %v3069_v49, %v1238_v52  ;;  %v1494_v15 = vmul.f32 %v3100_v26, %v3397_v19  ;;  %2328 = vmatprep.mubr.bf16.mxu1 %v1841_v6  ;;  %v1440_v18 = vadd.f32 %v1424_v33, %v1404_v42 }
 0x19f   : > { %v1474_v12 = vadd.f32 %v1458_v31, %v1438_v7  ;;  %v1495_v24 = vmul.f32 %v3100_v26, %v2894_v57  ;;  %v1530_v27 = vmul.f32 %v3151_v9, %v1319_v29  ;;  %v1441_v37 = vadd.f32 %v1425_v54, %v1405_v1  ;;  %v3841_v7 = vld [vmem:[#allocation20_spill] sm:$0xff] }
 0x1a0   : > { %v1475_v17 = vadd.f32 %v1459_v38, %v1439_v50  ;;  %v1531_v46 = vmul.f32 %v3151_v9, %v1326_v44  ;;  %v1566_v51 = vmul.f32 %v3137_v16, %v3023_v22  ;;  %v1567_v52 = vmul.f32 %v3137_v16, %v2974_v47  ;;  %v3518_v50 = vld [vmem:[#allocation2 + $0x48] sm:$0xff] }
 0x1a1   : > { %v1510_v28 = vadd.f32 %v1494_v15, %v1474_v12  ;;  %v1602_v19 = vmul.f32 %v3140_v53, %v2904_v0  ;;  %v1603_v42 = vmul.f32 %v3140_v53, %v2898_v58  ;;  %v1460_v1 = vmul.f32 %v3069_v49, %v3023_v22 }
 0x1a2   : > { %v1511_v57 = vadd.f32 %v1495_v24, %v1475_v17  ;;  %v1461_v33 = vmul.f32 %v3069_v49, %v2974_v47  ;;  %v1496_v29 = vmul.f32 %v3100_v26, %v2904_v0  ;;  %v1638_v39 = vmul.f32 %v3174_v43, %v3041_v35 }
 0x1a3   : > { %v1546_v44 = vadd.f32 %v1530_v27, %v1510_v28  ;;  %v1497_v23 = vmul.f32 %v3100_v26, %v2898_v58  ;;  %v1532_v2 = vmul.f32 %v3151_v9, %v3041_v35  ;;  %v1476_v30 = vadd.f32 %v1460_v1, %v1440_v18 }
 0x1a4   : > { %v1547_v55 = vadd.f32 %v1531_v46, %v1511_v57  ;;  %v1477_v41 = vadd.f32 %v1461_v33, %v1441_v37  ;;  %v1533_v22 = vmul.f32 %v3151_v9, %v3045_v63  ;;  %v1639_v0 = vmul.f32 %v3174_v43, %v3045_v63 }
 0x1a5   : > { %v1582_v47 = vadd.f32 %v1566_v51, %v1546_v44  ;;  %v1568_v32 = vmul.f32 %v3137_v16, %v3002_v10  ;;  %v1569_v34 = vmul.f32 %v3137_v16, %v2950_v59  ;;  %v1512_v36 = vadd.f32 %v1496_v29, %v1476_v30  ;;  %v3541_v30 = vld [vmem:[#allocation2 + $0x70] sm:$0xff] }
 0x1a6   : > { %v1583_v58 = vadd.f32 %v1567_v52, %v1547_v55  ;;  %v1513_v56 = vadd.f32 %v1497_v23, %v1477_v41  ;;  %v1604_v35 = vmul.f32 %v3140_v53, %v2896_v61  ;;  %v1605_v11 = vmul.f32 %v3140_v53, %v2900_v60 }
 0x1a7   : > { %v1618_v3 = vadd.f32 %v1602_v19, %v1582_v47  ;;  %v1640_v54 = vmul.f32 %v3174_v43, %v3840_v13  ;;  %v937_v63 = vadd.s32 128, %v2878_v45  ;;  %v1548_v10 = vadd.f32 %v1532_v2, %v1512_v36 }
 0x1a8   : > { %v1619_v31 = vadd.f32 %v1603_v42, %v1583_v58  ;;  %v1549_v6 = vadd.f32 %v1533_v22, %v1513_v56  ;;  %v1641_v59 = vmul.f32 %v3174_v43, %v3841_v7  ;;  %v938_v61 = vadd.s32 136, %v2878_v45 }
 0x1a9   : > { %v2456_v38 = vpop.eup %2455  ;;  %v1654_v15 = vadd.f32 %v1638_v39, %v1618_v3  ;;  %v1057_v18 = vand.u32 15, %v937_v63  ;;  %v1217_v60 = vrot.slane %v3301_v20, 7  ;;  %v1584_v37 = vadd.f32 %v1568_v32, %v1548_v10 }
 0x1aa   : > { %v2458_v12 = vpop.eup %2457  ;;  %v1815_v24 = vadd.f32 1.0, %v2456_v38  ;;  %v1655_v27 = vadd.f32 %v1639_v0, %v1619_v31  ;;  %v1585_v17 = vadd.f32 %v1569_v34, %v1549_v6  ;;  %v1218_v52 = vrot.slane %v3518_v50, 7 }
 0x1ab   : > { %v1816_v46 = vadd.f32 1.0, %v2458_v12  ;;  %v1677_v51 = vadd.f32 %v3200_v21, %v1654_v15  ;;  %vm3523_vm6 = vcmp.eq.s32.totalorder %v1057_v18, 0  ;;  %v1620_v57 = vadd.f32 %v1604_v35, %v1584_v37  ;;  %v3848_v18 = vld [vmem:[#allocation23_spill] sm:$0xff] }
 0x1ac   : > { %v1831_v19 = vmul.f32 %v1815_v24, %v1703_v8  ;;  %v3529_v42 = vadd.f32 %v3200_v21, %v1655_v27  ;;  %v1621_v1 = vadd.f32 %v1605_v11, %v1585_v17  ;;  %v3533_v33 = vadd.f32 %v3375_v5, %v3364_v48  ;;  %v3850_v24 = vld [vmem:[#allocation21_spill] sm:$0xff] }
 0x1ad   : > { %v1832_v29 = vmul.f32 %v1816_v46, %v3472_v25  ;;  %v1709_v44 = vmul.f32 0.044715, %v1677_v51  ;;  %v3844_v39 = vrot.slane %v3299_v14, 7  ;;  %v1656_v8 = vadd.f32 %v1640_v54, %v1620_v57 }
 0x1ae   : > { %v1710_v2 = vmul.f32 0.044715, %v3529_v42  ;;  %v1657_v55 = vadd.f32 %v1641_v59, %v1621_v1  ;;  %v1064_v41 = vand.u32 15, %v938_v61  ;;  %v1224_v48 = vsel %vm1221_vm3, %v1217_v60, %v1218_v52  ;;  %v3847_v59 = vld [vmem:[#allocation22_spill] sm:$0xff] }
 0x1af   : > { %v1225_v23 = vsel %vm1221_vm3, %v3844_v39, %v1217_v60  ;;  %v1842_v22 = vpack.c.bf16 %v1832_v29, %v1831_v19  ;;  %v1725_v47 = vmul.f32 %v1709_v44, %v1677_v51  ;;  %v3551_v0 = vadd.f32 %v3200_v21, %v1656_v8  ;;  %v3849_v60 = vld [vmem:[#allocation26_spill] sm:$0xff] }
 0x1b0   : > { %v1258_v5 = vsel %vm3523_vm6, 0.0, %v1225_v23  ;;  %v1726_v25 = vmul.f32 %v1710_v2, %v3529_v42  ;;  %v3554_v32 = vadd.f32 %v3200_v21, %v1657_v55  ;;  %v1299_v34 = vrot.slane %v3518_v50, 1 }
 0x1b1   : > { %v1542_v58 = vmul.f32 %v3151_v9, %v3335_v4  ;;  %v1543_v36 = vmul.f32 %v3151_v9, %v3356_v40  ;;  %2329 = vmatmul.mubr.bf16.gmra.mxu1 %v1842_v22  ;;  %v1741_v56 = vmul.f32 %v1725_v47, %v1677_v51  ;;  %v1300_v35 = vrot.slane %v3541_v30, 1 }
 0x1b2   : > { %v3562_v3 = vmul.f32 0.5, %v1677_v51  ;;  %v1742_v11 = vmul.f32 %v1726_v25, %v3529_v42  ;;  %v1711_v13 = vmul.f32 0.044715, %v3551_v0  ;;  %vm3566_vm7 = vcmp.eq.s32.totalorder %v1064_v41, 15 }
 0x1b3   : > { %v1757_v63 = vadd.f32 %v1741_v56, %v1677_v51  ;;  %v1712_v4 = vmul.f32 0.044715, %v3554_v32  ;;  %v1472_v31 = vmul.f32 %v3069_v49, %v1258_v5  ;;  %v1473_v40 = vmul.f32 %v3069_v49, %v1224_v48 }
 0x1b4   : > { %v1758_v10 = vadd.f32 %v1742_v11, %v3529_v42  ;;  %v1727_v6 = vmul.f32 %v1711_v13, %v3551_v0  ;;  %v1304_v7 = vsel %vm1302_vm8, %v1299_v34, %v1300_v35  ;;  %v1486_v38 = vadd.f32 %v3380_v62, %v3847_v59  ;;  %v3852_v11 = vld [vmem:[#allocation25_spill] sm:$0xff] }
 0x1b5   : > { %v1773_v15 = vmul.f32 0.7978846, %v1757_v63  ;;  %v1728_v61 = vmul.f32 %v1712_v4, %v3554_v32  ;;  %v1487_v12 = vadd.f32 %v3849_v60, %v3848_v18  ;;  %v1506_v49 = vmul.f32 %v3100_v26, %v3850_v24  ;;  %v3856_v18 = vld [vmem:[#allocation24_spill] sm:$0xff] }
 0x1b6   : > { %v1774_v27 = vmul.f32 0.7978846, %v1758_v10  ;;  %v1743_v37 = vmul.f32 %v1727_v6, %v3551_v0  ;;  %v3851_v17 = vrot.slane %v3301_v20, 1  ;;  %v1507_v62 = vmul.f32 %v3100_v26, %v3299_v14 }
 0x1b7   : > { %2459 = vtanh.f32 %v1773_v15  ;;  %v1744_v51 = vmul.f32 %v1728_v61, %v3554_v32  ;;  %v1340_v28 = vsel %vm3566_vm7, 0.0, %v1304_v7  ;;  %v1522_v19 = vadd.f32 %v1506_v49, %v1486_v38 }
 0x1b8   : > { %v1305_v46 = vsel %vm1302_vm8, %v3851_v17, %v1299_v34  ;;  %2461 = vtanh.f32 %v1774_v27  ;;  %v1759_v57 = vadd.f32 %v1743_v37, %v3551_v0  ;;  %v1523_v1 = vadd.f32 %v1507_v62, %v1487_v12  ;;  %v3858_v12 = vld [vmem:[#allocation27_spill] sm:$0xff] }
 0x1b9   : > { %v1578_v29 = vmul.f32 %v3137_v16, %v1258_v5  ;;  %v1760_v44 = vadd.f32 %v1744_v51, %v3554_v32  ;;  %v1558_v39 = vadd.f32 %v1542_v58, %v1522_v19  ;;  %v1579_v23 = vmul.f32 %v3137_v16, %v1224_v48 }
 0x1ba   : > { %v1614_v14 = vmul.f32 %v3140_v53, %v3301_v20  ;;  %v1775_v2 = vmul.f32 0.7978846, %v1759_v57  ;;  %v1559_v8 = vadd.f32 %v1543_v36, %v1523_v1  ;;  %v1615_v55 = vmul.f32 %v3140_v53, %v3518_v50 }
 0x1bb   : > { %v1650_v41 = vmul.f32 %v3174_v43, %v1305_v46  ;;  %v1776_v22 = vmul.f32 0.7978846, %v1760_v44  ;;  %v1594_v47 = vadd.f32 %v1578_v29, %v1558_v39  ;;  %v1651_v25 = vmul.f32 %v3174_v43, %v1340_v28 }
 0x1bc   : > { %v939_v5 = vadd.s32 144, %v2878_v45  ;;  %2463 = vtanh.f32 %v1775_v2  ;;  %v1595_v34 = vadd.f32 %v1579_v23, %v1559_v8  ;;  %v940_v48 = vadd.s32 152, %v2878_v45 }
 0x1bd   : > { %v1219_v58 = vrot.slane %v3541_v30, 7  ;;  %2465 = vtanh.f32 %v1776_v22  ;;  %v1630_v56 = vadd.f32 %v1614_v14, %v1594_v47  ;;  %v1301_v13 = vrot.slane %v3852_v11, 1 }
 0x1be   : > { %v1071_v36 = vand.u32 15, %v939_v5  ;;  %v1694_v54 = vmul.f32 0.5, %v3529_v42  ;;  %v1631_v63 = vadd.f32 %v1615_v55, %v1595_v34  ;;  %v1078_v4 = vand.u32 15, %v940_v48 }
 0x1bf   : > { %v1223_v10 = vsel %vm1221_vm3, %v1218_v52, %v1219_v58  ;;  %v1544_v6 = vmul.f32 %v3151_v9, %v1305_v46  ;;  %v1666_v7 = vadd.f32 %v1650_v41, %v1630_v56  ;;  %v3855_v38 = vrot.slane %v3852_v11, 7 }
 0x1c0   : > { %vm3616_vm9 = vcmp.eq.s32.totalorder %v1071_v36, 0  ;;  %v1667_v42 = vadd.f32 %v1651_v25, %v1631_v63  ;;  %v3857_v60 = vrot.slane %v3856_v18, 1  ;;  %v1488_v24 = vadd.f32 %v1472_v31, %v3858_v12 }
 0x1c1   : > { %v1222_v15 = vsel %vm1221_vm3, %v1219_v58, %v3855_v38  ;;  %v1260_v61 = vsel %vm3616_vm9, 0.0, %v1223_v10  ;;  %v3632_v49 = vadd.f32 %v3200_v21, %v1666_v7  ;;  %vm3634_vm10 = vcmp.eq.s32.totalorder %v1078_v4, 15 }
 0x1c2   : > { %v1322_v52 = vsel %vm1302_vm8, %v1301_v13, %v3857_v60  ;;  %v1489_v37 = vadd.f32 %v1473_v40, %v3533_v33  ;;  %v1508_v17 = vmul.f32 %v3100_v26, %v3301_v20  ;;  %v1695_v46 = vmul.f32 0.5, %v3551_v0 }
 0x1c3   : > { %v1545_v62 = vmul.f32 %v3151_v9, %v1340_v28  ;;  %v3644_v51 = vadd.f32 %v3200_v21, %v1667_v42  ;;  %v1509_v31 = vmul.f32 %v3100_v26, %v3518_v50  ;;  %v1721_v19 = vmul.f32 0.044715, %v3632_v49 }
 0x1c4   : > { %v1303_v33 = vsel %vm1302_vm8, %v1300_v35, %v1301_v13  ;;  %v1524_v40 = vadd.f32 %v1508_v17, %v1488_v24  ;;  %v1580_v20 = vmul.f32 %v3137_v16, %v1260_v61  ;;  %v2460_v57 = vpop.eup %2459  ;;  %v1342_v9 = vsel %vm3634_vm10, 0.0, %v1322_v52 }
 0x1c5   : > { %v1722_v0 = vmul.f32 0.044715, %v3644_v51  ;;  %v1525_v28 = vadd.f32 %v1509_v31, %v1489_v37  ;;  %v1581_v1 = vmul.f32 %v3137_v16, %v1222_v15  ;;  %v2462_v26 = vpop.eup %2461  ;;  %v1805_v50 = vadd.f32 1.0, %v2460_v57 }
 0x1c6   : > { %v1737_v29 = vmul.f32 %v1721_v19, %v3632_v49  ;;  %v1560_v44 = vadd.f32 %v1544_v6, %v1524_v40  ;;  %v1616_v45 = vmul.f32 %v3140_v53, %v3541_v30  ;;  %v1806_v35 = vadd.f32 1.0, %v2462_v26 }
 0x1c7   : > { %v1738_v39 = vmul.f32 %v1722_v0, %v3644_v51  ;;  %v1561_v23 = vadd.f32 %v1545_v62, %v1525_v28  ;;  %v1617_v14 = vmul.f32 %v3140_v53, %v3852_v11  ;;  %v1821_v2 = vmul.f32 %v1805_v50, %v3562_v3 }
 0x1c8   : > { %v1753_v8 = vmul.f32 %v1737_v29, %v3632_v49  ;;  %v1596_v16 = vadd.f32 %v1580_v20, %v1560_v44  ;;  %v1652_v55 = vmul.f32 %v3174_v43, %v1303_v33  ;;  %v1822_v41 = vmul.f32 %v1806_v35, %v1694_v54 }
 0x1c9   : > { %v1754_v22 = vmul.f32 %v1738_v39, %v3644_v51  ;;  %v1597_v47 = vadd.f32 %v1581_v1, %v1561_v23  ;;  %v1653_v30 = vmul.f32 %v3174_v43, %v1342_v9  ;;  %v2464_v25 = vpop.eup %2463  ;;  %v1696_v5 = vmul.f32 0.5, %v3554_v32 }
 0x1ca   : > { %v1769_v34 = vadd.f32 %v1753_v8, %v3632_v49  ;;  %v1632_v48 = vadd.f32 %v1616_v45, %v1596_v16  ;;  %v2466_v53 = vpop.eup %2465  ;;  %v1837_v58 = vpack.c.bf16 %v1822_v41, %v1821_v2  ;;  %v1807_v3 = vadd.f32 1.0, %v2464_v25  ;;  %v3861_v45 = vld [vmem:[#allocation9_spill] sm:$0xff] }
 0x1cb   : > { %v1770_v56 = vadd.f32 %v1754_v22, %v3644_v51  ;;  %v1633_v36 = vadd.f32 %v1617_v14, %v1597_v47  ;;  %v1808_v11 = vadd.f32 1.0, %v2466_v53  ;;  %v1705_v27 = vmul.f32 0.5, %v3632_v49  ;;  %v3862_v14 = vld [vmem:[#allocation7_spill] sm:$0xff]  ;;  %v3864_v47 = vld [vmem:[#allocation8_spill] sm:$0xff] }
 0x1cc   : > { %v1785_v13 = vmul.f32 0.7978846, %v1769_v34  ;;  %v1668_v54 = vadd.f32 %v1652_v55, %v1632_v48  ;;  %2320 = vmatprep.mubr.bf16.mxu0 %v1837_v58  ;;  %v1823_v63 = vmul.f32 %v1807_v3, %v1695_v46  ;;  %v1706_v17 = vmul.f32 0.5, %v3644_v51  ;;  %v2236_v51 = vld [vmem:[%s3750_s8] ss:$0 sm:$0xff]  ;;  %v3863_v55 = vld [vmem:[#allocation10_spill] sm:$0xff] }
 0x1cd   : > { %v1786_v4 = vmul.f32 0.7978846, %v1770_v56  ;;  %v1669_v10 = vadd.f32 %v1653_v30, %v1633_v36  ;;  %v1824_v43 = vmul.f32 %v1808_v11, %v1696_v5  ;;  %v3865_v48 = vld [vmem:[#allocation13_spill] sm:$0xff]  ;;  %v3866_v56 = vld [vmem:[#allocation11_spill] sm:$0xff] }
 0x1ce   : > { %2467 = vtanh.f32 %v1785_v13  ;;  %v1691_v32 = vadd.f32 %v3200_v21, %v1668_v54  ;;  %v3867_v54 = vld [vmem:[#allocation14_spill] sm:$0xff] }
 0x1cf   : > { %2469 = vtanh.f32 %v1786_v4  ;;  %v1692_v6 = vadd.f32 %v3200_v21, %v1669_v10  ;;  %v1838_v7 = vpack.c.bf16 %v1824_v43, %v1823_v63  ;;  %v3868_v10 = vld [vmem:[#allocation12_spill] sm:$0xff] }
 0x1d0   : > { %v1723_v59 = vmul.f32 0.044715, %v1691_v32  ;;  %v1707_v40 = vmul.f32 0.5, %v1691_v32 }
 0x1d1   : > { %v1724_v38 = vmul.f32 0.044715, %v1692_v6  ;;  %2321 = vmatmul.mubr.bf16.vlgmr.msra.gmra.mxu0 %v1838_v7  ;;  %v1708_v57 = vmul.f32 0.5, %v1692_v6 }
 0x1d2   : > { %v1739_v15 = vmul.f32 %v1723_v59, %v1691_v32  ;;  %v3869_v59 = vld [vmem:[#allocation5_spill] sm:$0xff] }
 0x1d3   : > { %v1740_v42 = vmul.f32 %v1724_v38, %v1692_v6 }
 0x1d4   : > { %v1755_v61 = vmul.f32 %v1739_v15, %v1691_v32 }
 0x1d5   : > { %v1756_v18 = vmul.f32 %v1740_v42, %v1692_v6 }
 0x1d6   : > { %v1771_v60 = vadd.f32 %v1755_v61, %v1691_v32  ;;  %v3870_v61 = vld [vmem:[#allocation3_spill] sm:$0xff] }
 0x1d7   : > { %v1772_v52 = vadd.f32 %v1756_v18, %v1692_v6 }
 0x1d8   : > { %v1787_v12 = vmul.f32 0.7978846, %v1771_v60 }
 0x1d9   : > { %v1788_v24 = vmul.f32 0.7978846, %v1772_v52 }
 0x1da   : > { %2471 = vtanh.f32 %v1787_v12  ;;  %v3871_v12 = vld [vmem:[#allocation6_spill] sm:$0xff] }
 0x1db   : > { %v2468_v37 = vpop.eup %2467  ;;  %2473 = vtanh.f32 %v1788_v24 }
 0x1dc   : > { %v2470_v21 = vpop.eup %2469  ;;  %v1817_v46 = vadd.f32 1.0, %v2468_v37  ;;  %v3872_v37 = vld [vmem:[#allocation4_spill] sm:$0xff] }
 0x1dd   : > { %v1818_v62 = vadd.f32 1.0, %v2470_v21 }
 0x1de   : > { %v1833_v31 = vmul.f32 %v1817_v46, %v1705_v27 }
 0x1df   : > { %v1834_v19 = vmul.f32 %v1818_v62, %v1706_v17 }
 0x1e1   : > { %v1843_v33 = vpack.c.bf16 %v1834_v19, %v1833_v31  ;;  %v3873_v31 = vld [vmem:[#allocation17_spill] sm:$0xff] }
 0x1e3   : > { %2332 = vmatprep.mubr.bf16.mxu1 %v1843_v33 }
 0x1e7   : > { %v2472_v20 = vpop.eup %2471 }
 0x1e8   : > { %v2474_v0 = vpop.eup %2473  ;;  %v1819_v9 = vadd.f32 1.0, %v2472_v20  ;;  %v3874_v20 = vld [vmem:[#allocation15_spill] sm:$0xff] }
 0x1e9   : > { %v1820_v28 = vadd.f32 1.0, %v2474_v0 }
 0x1ea   : > { %v1835_v49 = vmul.f32 %v1819_v9, %v1707_v40 }
 0x1eb   : > { %v1836_v1 = vmul.f32 %v1820_v28, %v1708_v57  ;;  %v3875_v28 = vld [vmem:[#allocation18_spill] sm:$0xff] }
 0x1ed   : > { %v1844_v26 = vpack.c.bf16 %v1836_v1, %v1835_v49 }
 0x1ef   : > { %2333 = vmatmul.mubr.bf16.gmra.mxu1 %v1844_v26  ;;  %v3876_v26 = vld [vmem:[#allocation16_spill] sm:$0xff] }
 0x24a   : > { %v2326_v50 = vpop.f32.mrf.mxu1 }
 0x24b   : > { %v1975_v29 = vadd.f32 %v2326_v50, %v2236_v51 }
 0x24c   : > { %v1966_v44 = vpop.f32.mrf.mxu1 }
 0x24d   : > { %v2019_v35 = vadd.f32 %v1975_v29, %v3861_v45  ;;  %v1967_v39 = vadd.f32 %v2236_v51, %v1966_v44 }
 0x24e   : > { %v2327_v23 = vpop.f32.mrf.mxu1 }
 0x24f   : > { %2035 = vst.msk [vmem:[%s2614_s27 + $0x30] sm:$0xff] %vm540_vm1, %v2019_v35  ;;  %v2017_v2 = vadd.f32 %v1967_v39, %v3862_v14  ;;  %v1978_v8 = vadd.f32 %v2327_v23, %v2236_v51 }
 0x250   : > { %v1969_v16 = vpop.f32.mrf.mxu1 }
 0x251   : > { %2033 = vst.msk [vmem:[%s2614_s27 + $0x20] sm:$0xff] %vm540_vm1, %v2017_v2  ;;  %v2020_v41 = vadd.f32 %v1978_v8, %v3863_v55  ;;  %v1970_v22 = vadd.f32 %v2236_v51, %v1969_v16 }
 0x253   : > { %2036 = vst.msk [vmem:[%s2614_s27 + $0x38] sm:$0xff] %vm540_vm1, %v2020_v41  ;;  %v2018_v30 = vadd.f32 %v1970_v22, %v3864_v47 }
 0x255   : > { %2034 = vst.msk [vmem:[%s2614_s27 + $0x28] sm:$0xff] %vm540_vm1, %v2018_v30 }
 0x271   : > { %v2330_v25 = vpop.f32.mrf.mxu1 }
 0x272   : > { %v1991_v5 = vadd.f32 %v2330_v25, %v2236_v51 }
 0x273   : > { %v1982_v34 = vpop.f32.mrf.mxu1 }
 0x274   : > { %v2023_v53 = vadd.f32 %v1991_v5, %v3865_v48  ;;  %v1983_v58 = vadd.f32 %v2236_v51, %v1982_v34 }
 0x275   : > { %v2331_v3 = vpop.f32.mrf.mxu1 }
 0x276   : > { %2039 = vst.msk [vmem:[%s2614_s27 + $0x50] sm:$0xff] %vm540_vm1, %v2023_v53  ;;  %v2021_v36 = vadd.f32 %v1983_v58, %v3866_v56  ;;  %v1994_v11 = vadd.f32 %v2331_v3, %v2236_v51 }
 0x277   : > { %v1985_v13 = vpop.f32.mrf.mxu1 }
 0x278   : > { %2037 = vst.msk [vmem:[%s2614_s27 + $0x40] sm:$0xff] %vm540_vm1, %v2021_v36  ;;  %v2024_v63 = vadd.f32 %v1994_v11, %v3867_v54  ;;  %v1986_v4 = vadd.f32 %v2236_v51, %v1985_v13 }
 0x27a   : > { %2040 = vst.msk [vmem:[%s2614_s27 + $0x58] sm:$0xff] %vm540_vm1, %v2024_v63  ;;  %v2022_v43 = vadd.f32 %v1986_v4, %v3868_v10 }
 0x27c   : > { %2038 = vst.msk [vmem:[%s2614_s27 + $0x48] sm:$0xff] %vm540_vm1, %v2022_v43 }
 0x291   : > { %v2322_v32 = vpop.f32.mrf.mxu0 }
 0x292   : > { %v1959_v6 = vadd.f32 %v2322_v32, %v2236_v51 }
 0x293   : > { %v1950_v7 = vpop.f32.mrf.mxu0 }
 0x294   : > { %v2015_v38 = vadd.f32 %v1959_v6, %v3869_v59  ;;  %v1951_v15 = vadd.f32 %v2236_v51, %v1950_v7 }
 0x295   : > { %v2323_v42 = vpop.f32.mrf.mxu0 }
 0x296   : > { %2031 = vst.msk [vmem:[%s2614_s27 + $0x10] sm:$0xff] %vm540_vm1, %v2015_v38  ;;  %v2013_v18 = vadd.f32 %v1951_v15, %v3870_v61  ;;  %v1962_v60 = vadd.f32 %v2323_v42, %v2236_v51 }
 0x297   : > { %v1953_v52 = vpop.f32.mrf.mxu0 }
 0x298   : > { %2029 = vst.msk [vmem:[%s2614_s27] sm:$0xff] %vm540_vm1, %v2013_v18  ;;  %v2016_v24 = vadd.f32 %v1962_v60, %v3871_v12  ;;  %v1954_v27 = vadd.f32 %v2236_v51, %v1953_v52 }
 0x29a   : > { %2032 = vst.msk [vmem:[%s2614_s27 + $0x18] sm:$0xff] %vm540_vm1, %v2016_v24  ;;  %v2014_v17 = vadd.f32 %v1954_v27, %v3872_v37 }
 0x29c   : > { %2030 = vst.msk [vmem:[%s2614_s27 + $0x8] sm:$0xff] %vm540_vm1, %v2014_v17 }
 0x2af   : > { %v2334_v21 = vpop.f32.mrf.mxu1 }
 0x2b0   : > { %v2007_v46 = vadd.f32 %v2334_v21, %v2236_v51 }
 0x2b1   : > { %v1998_v62 = vpop.f32.mrf.mxu1 }
 0x2b2   : > { %v2027_v19 = vadd.f32 %v2007_v46, %v3873_v31  ;;  %v1999_v33 = vadd.f32 %v2236_v51, %v1998_v62 }
 0x2b3   : > { %v2335_v40 = vpop.f32.mrf.mxu1 }
 0x2b4   : > { %2043 = vst.msk [vmem:[%s2614_s27 + $0x70] sm:$0xff] %vm540_vm1, %v2027_v19  ;;  %v2025_v57 = vadd.f32 %v1999_v33, %v3874_v20  ;;  %v2010_v0 = vadd.f32 %v2335_v40, %v2236_v51 }
 0x2b5   : > { %v2001_v9 = vpop.f32.mrf.mxu1 }
 0x2b6   : > { %2041 = vst.msk [vmem:[%s2614_s27 + $0x60] sm:$0xff] %vm540_vm1, %v2025_v57  ;;  %v2028_v49 = vadd.f32 %v2010_v0, %v3875_v28  ;;  %v2002_v1 = vadd.f32 %v2236_v51, %v2001_v9 }
 0x2b8   : > { %2044 = vst.msk [vmem:[%s2614_s27 + $0x78] sm:$0xff] %vm540_vm1, %v2028_v49  ;;  %v2026_v50 = vadd.f32 %v2002_v1, %v3876_v26 }
 0x2ba   : > { %2042 = vst.msk [vmem:[%s2614_s27 + $0x68] sm:$0xff] %vm540_vm1, %v2026_v50 }
 0x2bb PF: > { %s19_s13 = sadd.s32 1, %s2513_s13   ;;  %s3877_s30 = smov %s2505_s11 }
 0x2bc   : > { %p16_p12 = scmp.ge.s32.totalorder %s19_s13, 6   ;;  %s3878_s10 = smov %s2509_s12 }
 0x2bd   : > { %s3879_s11 = smov %s3882_s14  ;;  %s3880_s12 = smov %s3886_s15 }
 0x2be   :  { %18 = sbr.rel (!%p16_p12) target bundleno = 3 (0x3), region = 100 }

</bundles_post_ra>
